<compile_context>
chip_gen: v5e
topology: v5e:2x2
jax: 0.10.0
libtpu: 0.0.40
codegen_flags: <defaults>
</compile_context>

<pallas_src>
import jax
import jax.numpy as jnp
from jax.experimental import pallas as pl
from jax.experimental.pallas import tpu as pltpu

D_IN, D_H1, D_H2, D_H3, D_OUT = 768, 256, 64, 256, 768

_WEIGHT_ELEMS = D_IN * D_H1 + D_H1 * D_H2 + D_H2 * D_H3 + D_H3 * D_OUT
_BIAS_ELEMS = D_H1 + D_H2 + D_H3 + D_OUT
_FLOPS_PER_ROW = 2 * _WEIGHT_ELEMS


def dumnet_kernel(x_ref,
                  w1_ref, b1_ref,
                  w2_ref, b2_ref,
                  w3_ref, b3_ref,
                  w4_ref, b4_ref,
                  o_ref):
    bf16 = jnp.bfloat16
    # No-op when x is already bf16 (preferred); keeps the kernel robust to f32 inputs.
    x = x_ref[...].astype(bf16)                                    # (tb, 768)

    h = jnp.dot(x, w1_ref[...], preferred_element_type=jnp.float32) + b1_ref[...]
    h = jnp.maximum(h, 0.0)                                        # ReLU (f32)

    h = jnp.dot(h.astype(bf16), w2_ref[...], preferred_element_type=jnp.float32) + b2_ref[...]
    h = jnp.maximum(h, 0.0)                                        # ReLU (f32)

    h = jnp.dot(h.astype(bf16), w3_ref[...], preferred_element_type=jnp.float32) + b3_ref[...]
    h = jnp.maximum(h, 0.0)                                        # ReLU (f32)

    # dropout (eval mode) -> identity

    o = jnp.dot(h.astype(bf16), w4_ref[...], preferred_element_type=jnp.float32) + b4_ref[...]
    o_ref[...] = o.astype(o_ref.dtype)                             # bf16 output


def _pick_tb(B, tb_max=512, min_steps=4):
    """Batch tile: keep tiles in the 256-512 sweet spot, aim for >= min_steps grid steps
    (>= 2 per TensorCore on v7x) when the batch is large enough."""
    if B <= 8:
        return B
    if B >= min_steps * 256:
        cap = min(tb_max, B // min_steps)     # big batch: >= 4 steps, tiles >= 256
    elif B >= 2 * 256:
        cap = min(tb_max, B // 2)             # mid batch: >= 2 steps, tiles >= 256
    else:
        cap = min(tb_max, B)                  # small batch: one big tile
    tb = max((cap // 8) * 8, 8)
    while tb > 8 and B % tb != 0:
        tb -= 8
    return tb if B % tb == 0 else B


def dumnet_4l(x, params, *, tb=None):
    """x: [B, 768], preferably bf16 (f32 also accepted; cast happens in-kernel).
    params: w1..w4 bf16 [in, out] (= torch weight.T), b1..b4 f32 [1, out].
    Returns bf16 [B, 768]."""
    B, F = x.shape
    assert F == D_IN
    if tb is None:
        tb = _pick_tb(B)
    assert B % tb == 0 and (tb % 8 == 0 or tb == B)
    steps = B // tb

    def const_spec(shape):
        # Constant index_map -> fetched once; single-buffered to save VMEM.
        return pl.BlockSpec(shape, lambda i: (0, 0), pipeline_mode=pl.Buffered(1))

    # Deeper activation pipelining when there are enough steps to benefit.
    act_mode = pl.Buffered(3) if steps >= 3 else None

    x_bytes = x.size * x.dtype.itemsize
    cost = pl.CostEstimate(
        flops=_FLOPS_PER_ROW * B,
        transcendentals=0,
        bytes_accessed=(x_bytes                    # x in (bf16 preferred)
                        + B * D_OUT * 2            # out (bf16)
                        + _WEIGHT_ELEMS * 2        # bf16 weights
                        + _BIAS_ELEMS * 4))        # f32 biases

    return pl.pallas_call(
        dumnet_kernel,
        out_shape=jax.ShapeDtypeStruct((B, D_OUT), jnp.bfloat16),
        grid_spec=pltpu.PrefetchScalarGridSpec(
            num_scalar_prefetch=0,
            grid=(steps,),
            in_specs=[
                pl.BlockSpec((tb, D_IN), lambda i: (i, 0), pipeline_mode=act_mode),  # x tile
                const_spec((D_IN, D_H1)), const_spec((1, D_H1)),    # fc1
                const_spec((D_H1, D_H2)), const_spec((1, D_H2)),    # fc2
                const_spec((D_H2, D_H3)), const_spec((1, D_H3)),    # fc3
                const_spec((D_H3, D_OUT)), const_spec((1, D_OUT)),  # fc4
            ],
            out_specs=pl.BlockSpec((tb, D_OUT), lambda i: (i, 0), pipeline_mode=act_mode),
        ),
        compiler_params=pltpu.CompilerParams(
            dimension_semantics=("parallel",),
            vmem_limit_bytes=32 * 1024 * 1024),
        cost_estimate=cost,
    )(x,
      params["w1"], params["b1"],
      params["w2"], params["b2"],
      params["w3"], params["b3"],
      params["w4"], params["b4"])


def init_params(key):
    """nn.Linear-style init; weights stored transposed [in, out] in bf16, biases f32."""
    ks = jax.random.split(key, 8)
    def lin(kw, kb, fan_in, fan_out):
        bound = 1.0 / jnp.sqrt(float(fan_in))
        w = jax.random.uniform(kw, (fan_in, fan_out), jnp.float32, -bound, bound)
        b = jax.random.uniform(kb, (1, fan_out), jnp.float32, -bound, bound)
        return w.astype(jnp.bfloat16), b
    w1, b1 = lin(ks[0], ks[1], D_IN, D_H1)
    w2, b2 = lin(ks[2], ks[3], D_H1, D_H2)
    w3, b3 = lin(ks[4], ks[5], D_H2, D_H3)
    w4, b4 = lin(ks[6], ks[7], D_H3, D_OUT)
    return dict(w1=w1, b1=b1, w2=w2, b2=b2, w3=w3, b3=b3, w4=w4, b4=b4)


def dumnet_4l_ref(x, p):
    xf = x.astype(jnp.float32)
    w = lambda k: p[k].astype(jnp.float32)
    h = jnp.maximum(xf @ w("w1") + p["b1"], 0.0)
    h = jnp.maximum(h @ w("w2") + p["b2"], 0.0)
    h = jnp.maximum(h @ w("w3") + p["b3"], 0.0)
    return h @ w("w4") + p["b4"]


if __name__ == "__main__":
    key = jax.random.PRNGKey(0)
    k_x, k_p = jax.random.split(key)

    B = 64                                    # small test batch
    # Producer emits bf16 directly (no wrapper-side convert).
    x = jax.random.normal(k_x, (B, D_IN), jnp.bfloat16)
    params = init_params(k_p)

    ref = dumnet_4l_ref(x, params)

    # Default tile (single step for this small batch).
    out = jax.block_until_ready(dumnet_4l(x, params))
    assert out.shape == (B, D_OUT) and out.dtype == jnp.bfloat16
    err = float(jnp.max(jnp.abs(out.astype(jnp.float32) - ref)))
    assert jnp.allclose(out.astype(jnp.float32), ref, atol=7.5e-2, rtol=5e-2), err

    # Smaller tile to exercise the multi-step grid / pipeline path.
    out2 = jax.block_until_ready(dumnet_4l(x, params, tb=32))
    err2 = float(jnp.max(jnp.abs(out2.astype(jnp.float32) - ref)))
    assert jnp.allclose(out2.astype(jnp.float32), ref, atol=7.5e-2, rtol=5e-2), err2

    print("KERNEL_OK")
</pallas_src>

<mosaic_0001>
module attributes {stable_mosaic.version = 11 : i64} {
  func.func @dumnet_kernel(%arg0: i32, %arg1: memref<64x768xbf16, #tpu.memory_space<vmem>>, %arg2: memref<768x256xbf16, #tpu.memory_space<vmem>>, %arg3: memref<1x256xf32, #tpu.memory_space<vmem>>, %arg4: memref<256x64xbf16, #tpu.memory_space<vmem>>, %arg5: memref<1x64xf32, #tpu.memory_space<vmem>>, %arg6: memref<64x256xbf16, #tpu.memory_space<vmem>>, %arg7: memref<1x256xf32, #tpu.memory_space<vmem>>, %arg8: memref<256x768xbf16, #tpu.memory_space<vmem>>, %arg9: memref<1x768xf32, #tpu.memory_space<vmem>>, %arg10: memref<64x768xbf16, #tpu.memory_space<vmem>>) attributes {dimension_semantics = [#tpu.dimension_semantics<parallel>], iteration_bounds = array<i64: 1>, scalar_prefetch = 0 : i64, scratch_operands = 0 : i64, tpu.core_type = #tpu.core_type<tc>, window_params = [{transform_indices = @transform_0, window_bounds = array<i64: 64, 768>}, {pipeline_mode = #tpu.pipeline_mode<synchronous>, transform_indices = @transform_1, window_bounds = array<i64: 768, 256>}, {pipeline_mode = #tpu.pipeline_mode<synchronous>, transform_indices = @transform_2, window_bounds = array<i64: 1, 256>}, {pipeline_mode = #tpu.pipeline_mode<synchronous>, transform_indices = @transform_3, window_bounds = array<i64: 256, 64>}, {pipeline_mode = #tpu.pipeline_mode<synchronous>, transform_indices = @transform_4, window_bounds = array<i64: 1, 64>}, {pipeline_mode = #tpu.pipeline_mode<synchronous>, transform_indices = @transform_5, window_bounds = array<i64: 64, 256>}, {pipeline_mode = #tpu.pipeline_mode<synchronous>, transform_indices = @transform_6, window_bounds = array<i64: 1, 256>}, {pipeline_mode = #tpu.pipeline_mode<synchronous>, transform_indices = @transform_7, window_bounds = array<i64: 256, 768>}, {pipeline_mode = #tpu.pipeline_mode<synchronous>, transform_indices = @transform_8, window_bounds = array<i64: 1, 768>}, {transform_indices = @transform_9, window_bounds = array<i64: 64, 768>}]} {
    %c0 = arith.constant 0 : index
    %c0_0 = arith.constant 0 : index
    %0 = vector.load %arg1[%c0, %c0_0] : memref<64x768xbf16, #tpu.memory_space<vmem>>, vector<64x768xbf16>
    %c0_1 = arith.constant 0 : index
    %c0_2 = arith.constant 0 : index
    %1 = vector.load %arg2[%c0_1, %c0_2] : memref<768x256xbf16, #tpu.memory_space<vmem>>, vector<768x256xbf16>
    %cst = arith.constant dense<0.000000e+00> : vector<64x256xf32>
    %2 = tpu.matmul %0, %1, %cst {dimension_numbers = #tpu.dot_dimension_numbers<[1], [0], [0], [1], [0, 0, 1, 1], [], []>} : vector<64x768xbf16>, vector<768x256xbf16>, vector<64x256xf32> -> vector<64x256xf32>
    %c0_3 = arith.constant 0 : index
    %c0_4 = arith.constant 0 : index
    %3 = vector.load %arg3[%c0_3, %c0_4] : memref<1x256xf32, #tpu.memory_space<vmem>>, vector<1x256xf32>
    %4 = vector.broadcast %3 : vector<1x256xf32> to vector<64x256xf32>
    %5 = arith.addf %2, %4 : vector<64x256xf32>
    %cst_5 = arith.constant 0.000000e+00 : f32
    %6 = vector.broadcast %cst_5 : f32 to vector<64x256xf32>
    %7 = arith.maximumf %5, %6 : vector<64x256xf32>
    %8 = arith.truncf %7 : vector<64x256xf32> to vector<64x256xbf16>
    %c0_6 = arith.constant 0 : index
    %c0_7 = arith.constant 0 : index
    %9 = vector.load %arg4[%c0_6, %c0_7] : memref<256x64xbf16, #tpu.memory_space<vmem>>, vector<256x64xbf16>
    %cst_8 = arith.constant dense<0.000000e+00> : vector<64x64xf32>
    %10 = tpu.matmul %8, %9, %cst_8 {dimension_numbers = #tpu.dot_dimension_numbers<[1], [0], [0], [1], [0, 0, 1, 1], [], []>} : vector<64x256xbf16>, vector<256x64xbf16>, vector<64x64xf32> -> vector<64x64xf32>
    %c0_9 = arith.constant 0 : index
    %c0_10 = arith.constant 0 : index
    %11 = vector.load %arg5[%c0_9, %c0_10] : memref<1x64xf32, #tpu.memory_space<vmem>>, vector<1x64xf32>
    %12 = vector.broadcast %11 : vector<1x64xf32> to vector<64x64xf32>
    %13 = arith.addf %10, %12 : vector<64x64xf32>
    %cst_11 = arith.constant 0.000000e+00 : f32
    %14 = vector.broadcast %cst_11 : f32 to vector<64x64xf32>
    %15 = arith.maximumf %13, %14 : vector<64x64xf32>
    %16 = arith.truncf %15 : vector<64x64xf32> to vector<64x64xbf16>
    %c0_12 = arith.constant 0 : index
    %c0_13 = arith.constant 0 : index
    %17 = vector.load %arg6[%c0_12, %c0_13] : memref<64x256xbf16, #tpu.memory_space<vmem>>, vector<64x256xbf16>
    %cst_14 = arith.constant dense<0.000000e+00> : vector<64x256xf32>
    %18 = tpu.matmul %16, %17, %cst_14 {dimension_numbers = #tpu.dot_dimension_numbers<[1], [0], [0], [1], [0, 0, 1, 1], [], []>} : vector<64x64xbf16>, vector<64x256xbf16>, vector<64x256xf32> -> vector<64x256xf32>
    %c0_15 = arith.constant 0 : index
    %c0_16 = arith.constant 0 : index
    %19 = vector.load %arg7[%c0_15, %c0_16] : memref<1x256xf32, #tpu.memory_space<vmem>>, vector<1x256xf32>
    %20 = vector.broadcast %19 : vector<1x256xf32> to vector<64x256xf32>
    %21 = arith.addf %18, %20 : vector<64x256xf32>
    %cst_17 = arith.constant 0.000000e+00 : f32
    %22 = vector.broadcast %cst_17 : f32 to vector<64x256xf32>
    %23 = arith.maximumf %21, %22 : vector<64x256xf32>
    %24 = arith.truncf %23 : vector<64x256xf32> to vector<64x256xbf16>
    %c0_18 = arith.constant 0 : index
    %c0_19 = arith.constant 0 : index
    %25 = vector.load %arg8[%c0_18, %c0_19] : memref<256x768xbf16, #tpu.memory_space<vmem>>, vector<256x768xbf16>
    %cst_20 = arith.constant dense<0.000000e+00> : vector<64x768xf32>
    %26 = tpu.matmul %24, %25, %cst_20 {dimension_numbers = #tpu.dot_dimension_numbers<[1], [0], [0], [1], [0, 0, 1, 1], [], []>} : vector<64x256xbf16>, vector<256x768xbf16>, vector<64x768xf32> -> vector<64x768xf32>
    %c0_21 = arith.constant 0 : index
    %c0_22 = arith.constant 0 : index
    %27 = vector.load %arg9[%c0_21, %c0_22] : memref<1x768xf32, #tpu.memory_space<vmem>>, vector<1x768xf32>
    %28 = vector.broadcast %27 : vector<1x768xf32> to vector<64x768xf32>
    %29 = arith.addf %26, %28 : vector<64x768xf32>
    %30 = arith.truncf %29 : vector<64x768xf32> to vector<64x768xbf16>
    %c0_23 = arith.constant 0 : index
    %c0_24 = arith.constant 0 : index
    %31 = vector.load %arg10[%c0_23, %c0_24] : memref<64x768xbf16, #tpu.memory_space<vmem>>, vector<64x768xbf16>
    tpu.vector_store %arg10[%c0_23, %c0_24], %30 {strides = array<i32>} : memref<64x768xbf16, #tpu.memory_space<vmem>>, vector<64x768xbf16>,
    return
  }
  func.func @transform_0(%arg0: i32) -> (i32, i32) {
    %c0_i32 = arith.constant 0 : i32
    %c0_i32_0 = arith.constant 0 : i32
    return %arg0, %c0_i32 : i32, i32
  }
  func.func @transform_1(%arg0: i32) -> (i32, i32) {
    %c0_i32 = arith.constant 0 : i32
    %c0_i32_0 = arith.constant 0 : i32
    %c0_i32_1 = arith.constant 0 : i32
    return %c0_i32, %c0_i32_0 : i32, i32
  }
  func.func @transform_2(%arg0: i32) -> (i32, i32) {
    %c0_i32 = arith.constant 0 : i32
    %c0_i32_0 = arith.constant 0 : i32
    %c0_i32_1 = arith.constant 0 : i32
    return %c0_i32, %c0_i32_0 : i32, i32
  }
  func.func @transform_3(%arg0: i32) -> (i32, i32) {
    %c0_i32 = arith.constant 0 : i32
    %c0_i32_0 = arith.constant 0 : i32
    %c0_i32_1 = arith.constant 0 : i32
    return %c0_i32, %c0_i32_0 : i32, i32
  }
  func.func @transform_4(%arg0: i32) -> (i32, i32) {
    %c0_i32 = arith.constant 0 : i32
    %c0_i32_0 = arith.constant 0 : i32
    %c0_i32_1 = arith.constant 0 : i32
    return %c0_i32, %c0_i32_0 : i32, i32
  }
  func.func @transform_5(%arg0: i32) -> (i32, i32) {
    %c0_i32 = arith.constant 0 : i32
    %c0_i32_0 = arith.constant 0 : i32
    %c0_i32_1 = arith.constant 0 : i32
    return %c0_i32, %c0_i32_0 : i32, i32
  }
  func.func @transform_6(%arg0: i32) -> (i32, i32) {
    %c0_i32 = arith.constant 0 : i32
    %c0_i32_0 = arith.constant 0 : i32
    %c0_i32_1 = arith.constant 0 : i32
    return %c0_i32, %c0_i32_0 : i32, i32
  }
  func.func @transform_7(%arg0: i32) -> (i32, i32) {
    %c0_i32 = arith.constant 0 : i32
    %c0_i32_0 = arith.constant 0 : i32
    %c0_i32_1 = arith.constant 0 : i32
    return %c0_i32, %c0_i32_0 : i32, i32
  }
  func.func @transform_8(%arg0: i32) -> (i32, i32) {
    %c0_i32 = arith.constant 0 : i32
    %c0_i32_0 = arith.constant 0 : i32
    %c0_i32_1 = arith.constant 0 : i32
    return %c0_i32, %c0_i32_0 : i32, i32
  }
  func.func @transform_9(%arg0: i32) -> (i32, i32) {
    %c0_i32 = arith.constant 0 : i32
    %c0_i32_0 = arith.constant 0 : i32
    return %arg0, %c0_i32 : i32, i32
  }
}

</mosaic_0001>

<bundles_post_ra>
// kernel: tpu_custom_call.1
= control target key start
LH: loop header
LB: loop body
LE: loop exit
PB: predicated region body
PF: predicated region fallthrough
CT: control target
= control target key end

     0   :  { %14 = vsyncpa [#allocation3], 0  ;;  %s4659_s0 = inlined_call_operand.vmem [shape: bf16[64,768], index: 0, kind: input, shape index: {}]   ;;  %s4660_s1 = inlined_call_operand.hbm [shape: bf16[768,256], index: 1, kind: input, shape index: {}]   ;;  %s4661_s2 = inlined_call_operand.hbm [shape: f32[1,256], index: 2, kind: input, shape index: {}]   ;;  %s4662_s3 = inlined_call_operand.vmem [shape: bf16[256,64], index: 3, kind: input, shape index: {}]   ;;  %s4663_s4 = inlined_call_operand.hbm [shape: f32[1,64], index: 4, kind: input, shape index: {}]   ;;  %s4664_s5 = inlined_call_operand.hbm [shape: bf16[64,256], index: 5, kind: input, shape index: {}]   ;;  %s4665_s6 = inlined_call_operand.vmem [shape: f32[1,256], index: 6, kind: input, shape index: {}]   ;;  %s4666_s7 = inlined_call_operand.hbm [shape: bf16[256,768], index: 7, kind: input, shape index: {}]   ;;  %s4667_s8 = inlined_call_operand.hbm [shape: f32[1,768], index: 8, kind: input, shape index: {}]   ;;  %s4668_s9 = inlined_call_operand.hbm [shape: bf16[64,768], index: 9, kind: output, shape index: {}]  }
   0x1   :  { %15 = vsyncpa [#allocation6], 0 }
   0x2   :  { %16 = vsyncpa [#allocation9], 0 }
   0x3   :  { %17 = vsyncpa [#allocation12], 0  ;;  %s39_s11 = sshll.u32 %s4661_s2, 4  ;;  %s40_s11 = int_to_ptr.hbm [resolvable:$true] %s39_s11 }
   0x4   :  { %18 = vsyncpa [#allocation4], 0  ;;  %s3977_s12 = smov [#allocation5]   ;;  %s62_s16 = sshll.u32 %s4664_s5, 4  ;;  %s63_s16 = int_to_ptr.hbm [resolvable:$true] %s62_s16 }
   0x5   :  { %s41_s13 = sshll.u32 %s3977_s12, 4  ;;  %s3978_s17 = smov [#allocation8]   ;;  %s42_s13 = int_to_ptr.vmem [resolvable:$true] %s41_s13 }
   0x6   :  { %44 = dma.hbm_to_vmem [thread:$0]  %s40_s11, 32, %s42_s13, [#allocation6]  }
   0x7   :  { %s64_s18 = sshll.u32 %s3978_s17, 4  ;;  %s25_s21 = sshll.u32 %s4660_s1, 4  ;;  %s65_s18 = int_to_ptr.vmem [resolvable:$true] %s64_s18  ;;  %s26_s21 = int_to_ptr.hbm [resolvable:$true] %s25_s21 }
   0x8   :  { %s3979_s2 = smov 128   ;;  %s3980_s22 = smov 8  }
   0x9   :  { %70 = dma.hbm_to_vmem [thread:$0]  %s63_s16, 1024, %s65_s18, [#allocation9], %s3979_s2, %s3979_s2, %s3980_s22  }
   0xa   :  { %s52_s25 = sshll.u32 %s4663_s4, 4  ;;  %s3981_s26 = smov [#allocation2]   ;;  %s53_s25 = int_to_ptr.hbm [resolvable:$true] %s52_s25 }
   0xb   :  { %s27_s27 = sshll.u32 %s3981_s26, 4  ;;  %s3982_s5 = smov [#allocation7]   ;;  %s28_s27 = int_to_ptr.vmem [resolvable:$true] %s27_s27 }
   0xc   :  { %33 = dma.hbm_to_vmem [thread:$0]  %s26_s21, 12288, %s28_s27, [#allocation3], %s3979_s2, %s3979_s2, %s3980_s22  }
   0xd   :  { %s54_s28 = sshll.u32 %s3982_s5, 4  ;;  %s77_s1 = sshll.u32 %s4666_s7, 4  ;;  %s55_s28 = int_to_ptr.vmem [resolvable:$true] %s54_s28  ;;  %s78_s1 = int_to_ptr.hbm [resolvable:$true] %s77_s1 }
   0xe   :  { %57 = dma.hbm_to_vmem [thread:$0]  %s53_s25, 16, %s55_s28, [#allocation6]  }
   0xf   :  { %s3983_s10 = smov [#allocation10]   ;;  %s91_s4 = sshll.u32 %s4667_s8, 4  ;;  %s92_s4 = int_to_ptr.hbm [resolvable:$true] %s91_s4 }
  0x10   :  { %s79_s11 = sshll.u32 %s3983_s10, 4  ;;  %s3984_s14 = smov 384   ;;  %s80_s11 = int_to_ptr.vmem [resolvable:$true] %s79_s11 }
  0x11   :  { %s3985_s15 = smov 24   ;;  %s3986_s16 = smov [#allocation11]  }
  0x12   :  { %85 = dma.hbm_to_vmem [thread:$0]  %s78_s1, 12288, %s80_s11, [#allocation9], %s3984_s14, %s3984_s14, %s3985_s15  }
  0x13   :  { %s93_s17 = sshll.u32 %s3986_s16, 4  ;;  %s94_s17 = int_to_ptr.vmem [resolvable:$true] %s93_s17 }
  0x14   :  { %96 = dma.hbm_to_vmem [thread:$0]  %s92_s4, 96, %s94_s17, [#allocation12]  }
  0x15   :  { %3967 = dma.done.wait [#allocation3], 12288  }
  0x16   :  { %3968 = vsyncadd [#allocation3], 4294955008 }
  0x17   :  { %3969 = dma.done.wait [#allocation6], 48  }
  0x18   :  { %3970 = vsyncadd [#allocation6], 4294967248 }
  0x19   :  { %3971 = dma.done.wait [#allocation9], 13312  }
  0x1a   :  { %3972 = vsyncadd [#allocation9], 4294953984 }
  0x1b   :  { %3973 = dma.done.wait [#allocation12], 96  }
  0x1c   :  { %3974 = vsyncadd [#allocation12], 4294967200  ;;  %v2733_v0 = vld [vmem:[#allocation2 + $0x70] sm:$0xf]  ;;  %v3586_v1 = vld [vmem:[#allocation2 + $0x74] sm:$0xf0] }
  0x1d   :  { %v2797_v2 = vld [vmem:[#allocation2 + $0xf0] sm:$0xf]  ;;  %v2734_v3 = vor.u32 %v3586_v1, %v2733_v0  ;;  %v3602_v4 = vld [vmem:[#allocation2 + $0xf4] sm:$0xf0]  ;;  %v2725_v11 = vld [vmem:[#allocation2 + $0x60] sm:$0xf] }
  0x1e   :  { %v2861_v5 = vld [vmem:[#allocation2 + $0x170] sm:$0xf]  ;;  %v3618_v6 = vld [vmem:[#allocation2 + $0x174] sm:$0xf0]  ;;  %v2798_v7 = vor.u32 %v3602_v4, %v2797_v2  ;;  %v3584_v13 = vld [vmem:[#allocation2 + $0x64] sm:$0xf0] }
  0x1f   :  { %v2862_v8 = vor.u32 %v3618_v6, %v2861_v5  ;;  %v2925_v9 = vld [vmem:[#allocation2 + $0x1f0] sm:$0xf]  ;;  %v3634_v10 = vld [vmem:[#allocation2 + $0x1f4] sm:$0xf0]  ;;  %848 = vmatpush.bf16.msra.mxu0 %v2734_v3  ;;  %v2789_v14 = vld [vmem:[#allocation2 + $0xe0] sm:$0xf]  ;;  %v2726_v16 = vor.u32 %v3584_v13, %v2725_v11 }
  0x20   :  { %v2926_v12 = vor.u32 %v3634_v10, %v2925_v9  ;;  %v3600_v15 = vld [vmem:[#allocation2 + $0xe4] sm:$0xf0]  ;;  %877 = vmatpush.bf16.msra.mxu1 %v2798_v7  ;;  %v2853_v18 = vld [vmem:[#allocation2 + $0x160] sm:$0xf]  ;;  %v2717_v23 = vld [vmem:[#allocation2 + $0x50] sm:$0xf] }
  0x21   :  { %906 = vmatpush.bf16.msra.mxu2 %v2862_v8  ;;  %v2790_v17 = vor.u32 %v3600_v15, %v2789_v14  ;;  %v3616_v19 = vld [vmem:[#allocation2 + $0x164] sm:$0xf0]  ;;  %v2917_v20 = vld [vmem:[#allocation2 + $0x1e0] sm:$0xf]  ;;  %v3582_v24 = vld [vmem:[#allocation2 + $0x54] sm:$0xf0] }
  0x22   :  { %935 = vmatpush.bf16.msra.mxu3 %v2926_v12  ;;  %v2854_v21 = vor.u32 %v3616_v19, %v2853_v18  ;;  %v3632_v22 = vld [vmem:[#allocation2 + $0x1e4] sm:$0xf0]  ;;  %v2781_v26 = vld [vmem:[#allocation2 + $0xd0] sm:$0xf]  ;;  %v3598_v27 = vld [vmem:[#allocation2 + $0xd4] sm:$0xf0]  ;;  %v2718_v29 = vor.u32 %v3582_v24, %v2717_v23 }
  0x23   :  { %v2918_v25 = vor.u32 %v3632_v22, %v2917_v20  ;;  %v2845_v28 = vld [vmem:[#allocation2 + $0x150] sm:$0xf]  ;;  %849 = vmatpush.bf16.msra.mxu0 %v2726_v16  ;;  %v3614_v30 = vld [vmem:[#allocation2 + $0x154] sm:$0xf0]  ;;  %v2782_v33 = vor.u32 %v3598_v27, %v2781_v26  ;;  %v2709_v35 = vld [vmem:[#allocation2 + $0x40] sm:$0xf] }
  0x24   :  { %v2909_v31 = vld [vmem:[#allocation2 + $0x1d0] sm:$0xf]  ;;  %v3630_v32 = vld [vmem:[#allocation2 + $0x1d4] sm:$0xf0]  ;;  %878 = vmatpush.bf16.msra.mxu1 %v2790_v17  ;;  %v2846_v34 = vor.u32 %v3614_v30, %v2845_v28  ;;  %v3580_v36 = vld [vmem:[#allocation2 + $0x44] sm:$0xf0] }
  0x25   :  { %907 = vmatpush.bf16.msra.mxu2 %v2854_v21  ;;  %v2773_v37 = vld [vmem:[#allocation2 + $0xc0] sm:$0xf]  ;;  %v2910_v38 = vor.u32 %v3630_v32, %v2909_v31  ;;  %v3596_v39 = vld [vmem:[#allocation2 + $0xc4] sm:$0xf0]  ;;  %v2710_v44 = vor.u32 %v3580_v36, %v2709_v35  ;;  %v2701_v47 = vld [vmem:[#allocation2 + $0x30] sm:$0xf] }
  0x26   :  { %936 = vmatpush.bf16.msra.mxu3 %v2918_v25  ;;  %v2837_v40 = vld [vmem:[#allocation2 + $0x140] sm:$0xf]  ;;  %v3612_v41 = vld [vmem:[#allocation2 + $0x144] sm:$0xf0]  ;;  %v2774_v45 = vor.u32 %v3596_v39, %v2773_v37  ;;  %v3578_v48 = vld [vmem:[#allocation2 + $0x34] sm:$0xf0] }
  0x27   :  { %v2901_v42 = vld [vmem:[#allocation2 + $0x1c0] sm:$0xf]  ;;  %v3628_v43 = vld [vmem:[#allocation2 + $0x1c4] sm:$0xf0]  ;;  %850 = vmatpush.bf16.msra.mxu0 %v2718_v29  ;;  %v2838_v46 = vor.u32 %v3612_v41, %v2837_v40  ;;  %v2765_v49 = vld [vmem:[#allocation2 + $0xb0] sm:$0xf]  ;;  %v2702_v56 = vor.u32 %v3578_v48, %v2701_v47 }
  0x28   :  { %879 = vmatpush.bf16.msra.mxu1 %v2782_v33  ;;  %v2902_v50 = vor.u32 %v3628_v43, %v2901_v42  ;;  %v3594_v51 = vld [vmem:[#allocation2 + $0xb4] sm:$0xf0]  ;;  %v2829_v52 = vld [vmem:[#allocation2 + $0x130] sm:$0xf]  ;;  %v2693_v59 = vld [vmem:[#allocation2 + $0x20] sm:$0xf] }
  0x29   :  { %908 = vmatpush.bf16.msra.mxu2 %v2846_v34  ;;  %v3610_v53 = vld [vmem:[#allocation2 + $0x134] sm:$0xf0]  ;;  %v2893_v54 = vld [vmem:[#allocation2 + $0x1b0] sm:$0xf]  ;;  %v2766_v57 = vor.u32 %v3594_v51, %v2765_v49  ;;  %v3576_v60 = vld [vmem:[#allocation2 + $0x24] sm:$0xf0] }
  0x2a   :  { %937 = vmatpush.bf16.msra.mxu3 %v2910_v38  ;;  %v3626_v55 = vld [vmem:[#allocation2 + $0x1b4] sm:$0xf0]  ;;  %v2830_v58 = vor.u32 %v3610_v53, %v2829_v52  ;;  %v2757_v61 = vld [vmem:[#allocation2 + $0xa0] sm:$0xf]  ;;  %v3592_v63 = vld [vmem:[#allocation2 + $0xa4] sm:$0xf0]  ;;  %v2694_v4 = vor.u32 %v3576_v60, %v2693_v59 }
  0x2b   :  { %851 = vmatpush.bf16.msra.mxu0 %v2710_v44  ;;  %v2894_v62 = vor.u32 %v3626_v55, %v2893_v54  ;;  %v2821_v0 = vld [vmem:[#allocation2 + $0x120] sm:$0xf]  ;;  %v3608_v1 = vld [vmem:[#allocation2 + $0x124] sm:$0xf0]  ;;  %v2758_v5 = vor.u32 %v3592_v63, %v2757_v61  ;;  %v2685_v7 = vld [vmem:[#allocation2 + $0x10] sm:$0xf] }
  0x2c   :  { %880 = vmatpush.bf16.msra.mxu1 %v2774_v45  ;;  %v2885_v2 = vld [vmem:[#allocation2 + $0x1a0] sm:$0xf]  ;;  %v3624_v3 = vld [vmem:[#allocation2 + $0x1a4] sm:$0xf0]  ;;  %v2822_v6 = vor.u32 %v3608_v1, %v2821_v0  ;;  %v3574_v8 = vld [vmem:[#allocation2 + $0x14] sm:$0xf0] }
  0x2d   :  { %909 = vmatpush.bf16.msra.mxu2 %v2838_v46  ;;  %v2749_v9 = vld [vmem:[#allocation2 + $0x90] sm:$0xf]  ;;  %v2886_v10 = vor.u32 %v3624_v3, %v2885_v2  ;;  %v3590_v11 = vld [vmem:[#allocation2 + $0x94] sm:$0xf0]  ;;  %v2677_v16 = vld [vmem:[#allocation2] sm:$0xf]  ;;  %v2686_v17 = vor.u32 %v3574_v8, %v2685_v7 }
  0x2e   :  { %938 = vmatpush.bf16.msra.mxu3 %v2902_v50  ;;  %v2813_v12 = vld [vmem:[#allocation2 + $0x110] sm:$0xf]  ;;  %v3606_v13 = vld [vmem:[#allocation2 + $0x114] sm:$0xf0]  ;;  %v3572_v18 = vld [vmem:[#allocation2 + $0x4] sm:$0xf0]  ;;  %v2750_v21 = vor.u32 %v3590_v11, %v2749_v9 }
  0x2f   :  { %852 = vmatpush.bf16.msra.mxu0 %v2702_v56  ;;  %v2877_v14 = vld [vmem:[#allocation2 + $0x190] sm:$0xf]  ;;  %v3622_v15 = vld [vmem:[#allocation2 + $0x194] sm:$0xf0]  ;;  %v2741_v19 = vld [vmem:[#allocation2 + $0x80] sm:$0xf]  ;;  %v2814_v22 = vor.u32 %v3606_v13, %v2813_v12  ;;  %v2678_v34 = vor.u32 %v3572_v18, %v2677_v16 }
  0x30   :  { %881 = vmatpush.bf16.msra.mxu1 %v2766_v57  ;;  %v3588_v20 = vld [vmem:[#allocation2 + $0x84] sm:$0xf0]  ;;  %v2805_v23 = vld [vmem:[#allocation2 + $0x100] sm:$0xf]  ;;  %v2878_v26 = vor.u32 %v3622_v15, %v2877_v14  ;;  %v3550_v29 = vld [vmem:[%s4659_s0 + $0x14] sm:$0xf0] }
  0x31   :  { %910 = vmatpush.bf16.msra.mxu2 %v2830_v58  ;;  %v3604_v24 = vld [vmem:[#allocation2 + $0x104] sm:$0xf0]  ;;  %v2869_v25 = vld [vmem:[#allocation2 + $0x180] sm:$0xf]  ;;  %v3547_v30 = vld [vmem:[%s4659_s0 + $0x4] sm:$0xf]  ;;  %v2742_v38 = vor.u32 %v3588_v20, %v2741_v19 }
  0x32   :  { %939 = vmatpush.bf16.msra.mxu3 %v2894_v62  ;;  %v3620_v27 = vld [vmem:[#allocation2 + $0x184] sm:$0xf0]  ;;  %v2581_v28 = vld [vmem:[%s4659_s0] sm:$0xf]  ;;  %v2583_v31 = vld [vmem:[%s4659_s0 + $0x18] sm:$0xf0]  ;;  %v2806_v39 = vor.u32 %v3604_v24, %v2805_v23 }
  0x33   :  { %853 = vmatpush.bf16.msra.mxu0 %v2694_v4  ;;  %v3585_v32 = vld [vmem:[#allocation2 + $0x74] sm:$0xf]  ;;  %v2735_v33 = vld [vmem:[#allocation2 + $0x78] sm:$0xf0]  ;;  %v2589_v35 = vld [vmem:[%s4659_s0 + $0x8] sm:$0xf]  ;;  %v2870_v43 = vor.u32 %v3620_v27, %v2869_v25  ;;  %v4083_v48 = vor.u32 %v3550_v29, %v2581_v28  ;;  %v4085_v53 = vor.u32 %v3547_v30, %v2583_v31 }
  0x34   :  { %882 = vmatpush.bf16.msra.mxu1 %v2758_v5  ;;  %v3601_v36 = vld [vmem:[#allocation2 + $0xf4] sm:$0xf]  ;;  %v2799_v37 = vld [vmem:[#allocation2 + $0xf8] sm:$0xf0]  ;;  %v3551_v40 = vld [vmem:[%s4659_s0 + $0x1c] sm:$0xf0]  ;;  %v2738_v44 = vor.u32 %v3585_v32, %v2735_v33 }
  0x35   :  { %911 = vmatpush.bf16.msra.mxu2 %v2822_v6  ;;  %v3548_v41 = vld [vmem:[%s4659_s0 + $0xc] sm:$0xf]  ;;  %v2591_v42 = vld [vmem:[%s4659_s0 + $0x20] sm:$0xf0]  ;;  %v2989_v45 = vld [vmem:[#allocation2 + $0x270] sm:$0xf]  ;;  %v2802_v49 = vor.u32 %v3601_v36, %v2799_v37  ;;  %v4087_v54 = vor.u32 %v3551_v40, %v2589_v35 }
  0x36   :  { %940 = vmatpush.bf16.msra.mxu3 %v2886_v10  ;;  %v3650_v46 = vld [vmem:[#allocation2 + $0x274] sm:$0xf0]  ;;  %v3053_v47 = vld [vmem:[#allocation2 + $0x2f0] sm:$0xf]  ;;  %v3583_v51 = vld [vmem:[#allocation2 + $0x64] sm:$0xf]  ;;  %v4089_v57 = vor.u32 %v3548_v41, %v2591_v42 }
  0x37   :  { %854 = vmatpush.bf16.msra.mxu0 %v2686_v17  ;;  %v3666_v50 = vld [vmem:[#allocation2 + $0x2f4] sm:$0xf0]  ;;  %v2727_v52 = vld [vmem:[#allocation2 + $0x68] sm:$0xf0]  ;;  %v3599_v55 = vld [vmem:[#allocation2 + $0xe4] sm:$0xf]  ;;  %v2990_v58 = vor.u32 %v3650_v46, %v2989_v45 }
  0x38   :  { %883 = vmatpush.bf16.msra.mxu1 %v2750_v21  ;;  %v2791_v56 = vld [vmem:[#allocation2 + $0xe8] sm:$0xf0]  ;;  %v3054_v59 = vor.u32 %v3666_v50, %v3053_v47  ;;  %v2730_v60 = vor.u32 %v3583_v51, %v2727_v52  ;;  %v2981_v61 = vld [vmem:[#allocation2 + $0x260] sm:$0xf]  ;;  %v3648_v62 = vld [vmem:[#allocation2 + $0x264] sm:$0xf0] }
  0x39   :  { %912 = vmatpush.bf16.msra.mxu2 %v2814_v22  ;;  %v3045_v63 = vld [vmem:[#allocation2 + $0x2e0] sm:$0xf]  ;;  %v2794_v0 = vor.u32 %v3599_v55, %v2791_v56  ;;  %v3664_v1 = vld [vmem:[#allocation2 + $0x2e4] sm:$0xf0]  ;;  %v3581_v2 = vld [vmem:[#allocation2 + $0x54] sm:$0xf]  ;;  %v2982_v6 = vor.u32 %v3648_v62, %v2981_v61 }
  0x3a   :  { %941 = vmatpush.bf16.msra.mxu3 %v2878_v26  ;;  %v2719_v3 = vld [vmem:[#allocation2 + $0x58] sm:$0xf0]  ;;  %v3597_v4 = vld [vmem:[#allocation2 + $0xd4] sm:$0xf]  ;;  %v3046_v7 = vor.u32 %v3664_v1, %v3045_v63  ;;  %v2973_v9 = vld [vmem:[#allocation2 + $0x250] sm:$0xf] }
  0x3b   :  { %855 = vmatpush.bf16.msra.mxu0 %v2678_v34  ;;  %v2783_v5 = vld [vmem:[#allocation2 + $0xd8] sm:$0xf0]  ;;  %v2722_v8 = vor.u32 %v3581_v2, %v2719_v3  ;;  %v3646_v10 = vld [vmem:[#allocation2 + $0x254] sm:$0xf0]  ;;  %v3037_v11 = vld [vmem:[#allocation2 + $0x2d0] sm:$0xf] }
  0x3c   :  { %884 = vmatpush.bf16.msra.mxu1 %v2742_v38  ;;  %v2786_v12 = vor.u32 %v3597_v4, %v2783_v5  ;;  %v3662_v13 = vld [vmem:[#allocation2 + $0x2d4] sm:$0xf0]  ;;  %v3579_v14 = vld [vmem:[#allocation2 + $0x44] sm:$0xf]  ;;  %v2711_v15 = vld [vmem:[#allocation2 + $0x48] sm:$0xf0]  ;;  %v2974_v18 = vor.u32 %v3646_v10, %v2973_v9 }
  0x3d   :  { %913 = vmatpush.bf16.msra.mxu2 %v2806_v39  ;;  %v3595_v16 = vld [vmem:[#allocation2 + $0xc4] sm:$0xf]  ;;  %v2775_v17 = vld [vmem:[#allocation2 + $0xc8] sm:$0xf0]  ;;  %v2605_v19 = vld [vmem:[%s4659_s0 + $0x30] sm:$0xf]  ;;  %v3038_v21 = vor.u32 %v3662_v13, %v3037_v11  ;;  %v2714_v22 = vor.u32 %v3579_v14, %v2711_v15 }
  0x3e   :  { %942 = vmatpush.bf16.msra.mxu3 %v2870_v43  ;;  %856 = vmatmul.bf16.vlgmr.msra.gmra.mxu0 %v4083_v48  ;;  %v3556_v20 = vld [vmem:[%s4659_s0 + $0x44] sm:$0xf0]  ;;  %v2965_v23 = vld [vmem:[#allocation2 + $0x240] sm:$0xf]  ;;  %v3553_v26 = vld [vmem:[%s4659_s0 + $0x34] sm:$0xf]  ;;  %v2778_v29 = vor.u32 %v3595_v16, %v2775_v17 }
  0x3f   :  { %885 = vmatmul.bf16.vlgmr.msra.gmra.mxu1 %v4085_v53  ;;  %964 = vmatpush.bf16.msrb.mxu0 %v2990_v58  ;;  %v3644_v24 = vld [vmem:[#allocation2 + $0x244] sm:$0xf0]  ;;  %v3029_v25 = vld [vmem:[#allocation2 + $0x2c0] sm:$0xf]  ;;  %v2607_v27 = vld [vmem:[%s4659_s0 + $0x48] sm:$0xf0]  ;;  %v4119_v45 = vor.u32 %v3556_v20, %v2605_v19 }
  0x40   :  { %914 = vmatmul.bf16.vlgmr.msra.gmra.mxu2 %v4087_v54  ;;  %993 = vmatpush.bf16.msrb.mxu1 %v3054_v59  ;;  %v2613_v28 = vld [vmem:[%s4659_s0 + $0x38] sm:$0xf]  ;;  %v3660_v30 = vld [vmem:[#allocation2 + $0x2c4] sm:$0xf0]  ;;  %v3577_v31 = vld [vmem:[#allocation2 + $0x34] sm:$0xf]  ;;  %v2966_v38 = vor.u32 %v3644_v24, %v2965_v23  ;;  %v4121_v50 = vor.u32 %v3553_v26, %v2607_v27 }
  0x41   :  { %1022 = vmatpush.bf16.msrb.mxu2 %v2738_v44  ;;  %943 = vmatmul.bf16.vlgmr.msra.gmra.mxu3 %v4089_v57  ;;  %v2703_v32 = vld [vmem:[#allocation2 + $0x38] sm:$0xf0]  ;;  %v3557_v33 = vld [vmem:[%s4659_s0 + $0x4c] sm:$0xf0]  ;;  %v3593_v34 = vld [vmem:[#allocation2 + $0xb4] sm:$0xf]  ;;  %v3030_v40 = vor.u32 %v3660_v30, %v3029_v25 }
  0x42   :  { %1051 = vmatpush.bf16.msrb.mxu3 %v2802_v49  ;;  %v2767_v35 = vld [vmem:[#allocation2 + $0xb8] sm:$0xf0]  ;;  %v2615_v37 = vld [vmem:[%s4659_s0 + $0x50] sm:$0xf0]  ;;  %v2957_v39 = vld [vmem:[#allocation2 + $0x230] sm:$0xf]  ;;  %v2706_v41 = vor.u32 %v3577_v31, %v2703_v32  ;;  %v4123_v51 = vor.u32 %v3557_v33, %v2613_v28 }
  0x43   :  { %965 = vmatpush.bf16.msrb.mxu0 %v2982_v6  ;;  %v3554_v36 = vld [vmem:[%s4659_s0 + $0x3c] sm:$0xf]  ;;  %v3642_v42 = vld [vmem:[#allocation2 + $0x234] sm:$0xf0]  ;;  %v3021_v43 = vld [vmem:[#allocation2 + $0x2b0] sm:$0xf]  ;;  %v2770_v46 = vor.u32 %v3593_v34, %v2767_v35 }
  0x44   :  { %994 = vmatpush.bf16.msrb.mxu1 %v3046_v7  ;;  %v3658_v44 = vld [vmem:[#allocation2 + $0x2b4] sm:$0xf0]  ;;  %v3575_v47 = vld [vmem:[#allocation2 + $0x24] sm:$0xf]  ;;  %v2695_v49 = vld [vmem:[#allocation2 + $0x28] sm:$0xf0]  ;;  %v4125_v56 = vor.u32 %v3554_v36, %v2615_v37  ;;  %v2958_v58 = vor.u32 %v3642_v42, %v2957_v39 }
  0x45   :  { %1023 = vmatpush.bf16.msrb.mxu2 %v2730_v60  ;;  %v3591_v52 = vld [vmem:[#allocation2 + $0xa4] sm:$0xf]  ;;  %v2759_v55 = vld [vmem:[#allocation2 + $0xa8] sm:$0xf0]  ;;  %v3022_v59 = vor.u32 %v3658_v44, %v3021_v43  ;;  %v2698_v60 = vor.u32 %v3575_v47, %v2695_v49  ;;  %v2949_v61 = vld [vmem:[#allocation2 + $0x220] sm:$0xf] }
  0x46   :  { %1052 = vmatpush.bf16.msrb.mxu3 %v2794_v0  ;;  %v3640_v62 = vld [vmem:[#allocation2 + $0x224] sm:$0xf0]  ;;  %v2762_v63 = vor.u32 %v3591_v52, %v2759_v55  ;;  %v3013_v0 = vld [vmem:[#allocation2 + $0x2a0] sm:$0xf]  ;;  %v3573_v3 = vld [vmem:[#allocation2 + $0x14] sm:$0xf] }
  0x47   :  { %966 = vmatpush.bf16.msrb.mxu0 %v2974_v18  ;;  %v3656_v1 = vld [vmem:[#allocation2 + $0x2a4] sm:$0xf0]  ;;  %v2950_v2 = vor.u32 %v3640_v62, %v2949_v61  ;;  %v2687_v4 = vld [vmem:[#allocation2 + $0x18] sm:$0xf0]  ;;  %v2941_v5 = vld [vmem:[#allocation2 + $0x210] sm:$0xf] }
  0x48   :  { %995 = vmatpush.bf16.msrb.mxu1 %v3038_v21  ;;  %v3014_v6 = vor.u32 %v3656_v1, %v3013_v0  ;;  %v2690_v7 = vor.u32 %v3573_v3, %v2687_v4  ;;  %v3589_v9 = vld [vmem:[#allocation2 + $0x94] sm:$0xf]  ;;  %v2751_v10 = vld [vmem:[#allocation2 + $0x98] sm:$0xf0]  ;;  %v3654_v13 = vld [vmem:[#allocation2 + $0x294] sm:$0xf0] }
  0x49   :  { %1024 = vmatpush.bf16.msrb.mxu2 %v2722_v8  ;;  %v3638_v8 = vld [vmem:[#allocation2 + $0x214] sm:$0xf0]  ;;  %v2754_v11 = vor.u32 %v3589_v9, %v2751_v10  ;;  %v3571_v14 = vld [vmem:[#allocation2 + $0x4] sm:$0xf]  ;;  %v2679_v15 = vld [vmem:[#allocation2 + $0x8] sm:$0xf0] }
  0x4a   :  { %1053 = vmatpush.bf16.msrb.mxu3 %v2786_v12  ;;  %v3005_v12 = vld [vmem:[#allocation2 + $0x290] sm:$0xf]  ;;  %v2942_v16 = vor.u32 %v3638_v8, %v2941_v5  ;;  %v3587_v17 = vld [vmem:[#allocation2 + $0x84] sm:$0xf]  ;;  %v2743_v18 = vld [vmem:[#allocation2 + $0x88] sm:$0xf0]  ;;  %v2682_v20 = vor.u32 %v3571_v14, %v2679_v15 }
  0x4b   :  { %967 = vmatpush.bf16.msrb.mxu0 %v2966_v38  ;;  %v3006_v19 = vor.u32 %v3654_v13, %v3005_v12  ;;  %v2933_v21 = vld [vmem:[#allocation2 + $0x200] sm:$0xf]  ;;  %v2746_v23 = vor.u32 %v3587_v17, %v2743_v18  ;;  %v3652_v25 = vld [vmem:[#allocation2 + $0x284] sm:$0xf0]  ;;  %v3562_v27 = vld [vmem:[%s4659_s0 + $0x74] sm:$0xf0] }
  0x4c   :  { %996 = vmatpush.bf16.msrb.mxu1 %v3030_v40  ;;  %v2997_v24 = vld [vmem:[#allocation2 + $0x280] sm:$0xf]  ;;  %v3559_v28 = vld [vmem:[%s4659_s0 + $0x64] sm:$0xf]  ;;  %v2637_v30 = vld [vmem:[%s4659_s0 + $0x68] sm:$0xf] }
  0x4d   :  { %1025 = vmatpush.bf16.msrb.mxu2 %v2714_v22  ;;  %v3636_v22 = vld [vmem:[#allocation2 + $0x204] sm:$0xf0]  ;;  %v2629_v26 = vld [vmem:[%s4659_s0 + $0x60] sm:$0xf]  ;;  %v3560_v33 = vld [vmem:[%s4659_s0 + $0x6c] sm:$0xf]  ;;  %v2998_v35 = vor.u32 %v3652_v25, %v2997_v24 }
  0x4e   :  { %1054 = vmatpush.bf16.msrb.mxu3 %v2778_v29  ;;  %861 = vmatmul.bf16.gmra.mxu0 %v4119_v45  ;;  %v2631_v29 = vld [vmem:[%s4659_s0 + $0x78] sm:$0xf0]  ;;  %v3563_v31 = vld [vmem:[%s4659_s0 + $0x7c] sm:$0xf0]  ;;  %v2934_v32 = vor.u32 %v3636_v22, %v2933_v21  ;;  %v2639_v34 = vld [vmem:[%s4659_s0 + $0x80] sm:$0xf0]  ;;  %v4155_v36 = vor.u32 %v3562_v27, %v2629_v26 }
  0x4f   :  { %890 = vmatmul.bf16.gmra.mxu1 %v4121_v50  ;;  %968 = vmatpush.bf16.msrb.mxu0 %v2958_v58  ;;  %v4157_v37 = vor.u32 %v3559_v28, %v2631_v29  ;;  %v4159_v38 = vor.u32 %v3563_v31, %v2637_v30  ;;  %v4161_v39 = vor.u32 %v3560_v33, %v2639_v34  ;;  %v3649_v40 = vld [vmem:[#allocation2 + $0x274] sm:$0xf]  ;;  %v2863_v44 = vld [vmem:[#allocation2 + $0x178] sm:$0xf0]  ;;  %v2983_v61 = vld [vmem:[#allocation2 + $0x268] sm:$0xf0] }
  0x50   :  { %919 = vmatmul.bf16.gmra.mxu2 %v4123_v51  ;;  %997 = vmatpush.bf16.msrb.mxu1 %v3022_v59  ;;  %v3617_v42 = vld [vmem:[#allocation2 + $0x174] sm:$0xf]  ;;  %v3055_v47 = vld [vmem:[#allocation2 + $0x2f8] sm:$0xf0]  ;;  %v3647_v59 = vld [vmem:[#allocation2 + $0x264] sm:$0xf] }
  0x51   :  { %1026 = vmatpush.bf16.msrb.mxu2 %v2706_v41  ;;  %948 = vmatmul.bf16.gmra.mxu3 %v4125_v56  ;;  %v2991_v41 = vld [vmem:[#allocation2 + $0x278] sm:$0xf0]  ;;  %v2866_v49 = vor.u32 %v3617_v42, %v2863_v44  ;;  %v3633_v55 = vld [vmem:[#allocation2 + $0x1f4] sm:$0xf]  ;;  %v3615_v62 = vld [vmem:[#allocation2 + $0x164] sm:$0xf]  ;;  %v2986_v0 = vor.u32 %v3647_v59, %v2983_v61 }
  0x52   :  { %1055 = vmatpush.bf16.msrb.mxu3 %v2770_v46  ;;  %v2994_v43 = vor.u32 %v3649_v40, %v2991_v41  ;;  %v3665_v46 = vld [vmem:[#allocation2 + $0x2f4] sm:$0xf]  ;;  %v2927_v58 = vld [vmem:[#allocation2 + $0x1f8] sm:$0xf0]  ;;  %v3047_v3 = vld [vmem:[#allocation2 + $0x2e8] sm:$0xf0] }
  0x53   :  { %969 = vmatpush.bf16.msrb.mxu0 %v2950_v2  ;;  %v3058_v52 = vor.u32 %v3665_v46, %v3055_v47  ;;  %v3663_v2 = vld [vmem:[#allocation2 + $0x2e4] sm:$0xf]  ;;  %v2653_v8 = vld [vmem:[%s4659_s0 + $0x90] sm:$0xf]  ;;  %v3568_v9 = vld [vmem:[%s4659_s0 + $0xa4] sm:$0xf0] }
  0x54   :  { %998 = vmatpush.bf16.msrb.mxu1 %v3014_v6  ;;  %v3631_v4 = vld [vmem:[#allocation2 + $0x1e4] sm:$0xf]  ;;  %v3050_v5 = vor.u32 %v3663_v2, %v3047_v3  ;;  %v2919_v6 = vld [vmem:[#allocation2 + $0x1e8] sm:$0xf0]  ;;  %v3565_v10 = vld [vmem:[%s4659_s0 + $0x94] sm:$0xf] }
  0x55   :  { %1027 = vmatpush.bf16.msrb.mxu2 %v2698_v60  ;;  %v2930_v60 = vor.u32 %v3633_v55, %v2927_v58  ;;  %v2661_v12 = vld [vmem:[%s4659_s0 + $0x98] sm:$0xf]  ;;  %v3569_v13 = vld [vmem:[%s4659_s0 + $0xac] sm:$0xf0]  ;;  %v3566_v14 = vld [vmem:[%s4659_s0 + $0x9c] sm:$0xf] }
  0x56   :  { %1056 = vmatpush.bf16.msrb.mxu3 %v2762_v63  ;;  %v2855_v63 = vld [vmem:[#allocation2 + $0x168] sm:$0xf0]  ;;  %v2663_v15 = vld [vmem:[%s4659_s0 + $0xb0] sm:$0xf0]  ;;  %v4195_v18 = vor.u32 %v3569_v13, %v2661_v12  ;;  %v2975_v21 = vld [vmem:[#allocation2 + $0x258] sm:$0xf0] }
  0x57   :  { %970 = vmatpush.bf16.msrb.mxu0 %v2942_v16  ;;  %v2858_v1 = vor.u32 %v3615_v62, %v2855_v63  ;;  %v4191_v16 = vor.u32 %v3568_v9, %v2653_v8  ;;  %v3613_v22 = vld [vmem:[#allocation2 + $0x154] sm:$0xf]  ;;  %v2847_v24 = vld [vmem:[#allocation2 + $0x158] sm:$0xf0]  ;;  %v3643_v31 = vld [vmem:[#allocation2 + $0x244] sm:$0xf] }
  0x58   :  { %999 = vmatpush.bf16.msrb.mxu1 %v3006_v19  ;;  %v4197_v19 = vor.u32 %v3566_v14, %v2663_v15  ;;  %v3661_v25 = vld [vmem:[#allocation2 + $0x2d4] sm:$0xf]  ;;  %v3039_v26 = vld [vmem:[#allocation2 + $0x2d8] sm:$0xf0]  ;;  %v2850_v27 = vor.u32 %v3613_v22, %v2847_v24  ;;  %v2967_v33 = vld [vmem:[#allocation2 + $0x248] sm:$0xf0] }
  0x59   :  { %1028 = vmatpush.bf16.msrb.mxu2 %v2690_v7  ;;  %v2922_v7 = vor.u32 %v3631_v4, %v2919_v6  ;;  %v3042_v28 = vor.u32 %v3661_v25, %v3039_v26  ;;  %v3629_v29 = vld [vmem:[#allocation2 + $0x1d4] sm:$0xf]  ;;  %v2911_v30 = vld [vmem:[#allocation2 + $0x1d8] sm:$0xf0]  ;;  %v3611_v34 = vld [vmem:[#allocation2 + $0x144] sm:$0xf]  ;;  %v2970_v40 = vor.u32 %v3643_v31, %v2967_v33 }
  0x5a   :  { %1057 = vmatpush.bf16.msrb.mxu3 %v2754_v11  ;;  %v2655_v11 = vld [vmem:[%s4659_s0 + $0xa8] sm:$0xf0]  ;;  %v3659_v42 = vld [vmem:[#allocation2 + $0x2c4] sm:$0xf]  ;;  %v3552_v55 = vld [vmem:[%s4659_s0 + $0x24] sm:$0xf0] }
  0x5b   :  { %971 = vmatpush.bf16.msrb.mxu0 %v2934_v32  ;;  %v4193_v17 = vor.u32 %v3565_v10, %v2655_v11  ;;  %v2914_v32 = vor.u32 %v3629_v29, %v2911_v30  ;;  %v3627_v44 = vld [vmem:[#allocation2 + $0x1c4] sm:$0xf]  ;;  %v2903_v47 = vld [vmem:[#allocation2 + $0x1c8] sm:$0xf0]  ;;  %v3549_v58 = vld [vmem:[%s4659_s0 + $0x14] sm:$0xf] }
  0x5c   :  { %1000 = vmatpush.bf16.msrb.mxu1 %v2998_v35  ;;  %v2839_v35 = vld [vmem:[#allocation2 + $0x148] sm:$0xf0]  ;;  %v3641_v62 = vld [vmem:[#allocation2 + $0x234] sm:$0xf]  ;;  %v2959_v63 = vld [vmem:[#allocation2 + $0x238] sm:$0xf0] }
  0x5d   :  { %1029 = vmatpush.bf16.msrb.mxu2 %v2682_v20  ;;  %v3645_v20 = vld [vmem:[#allocation2 + $0x254] sm:$0xf]  ;;  %v2842_v41 = vor.u32 %v3611_v34, %v2839_v35  ;;  %v2599_v59 = vld [vmem:[%s4659_s0 + $0x28] sm:$0xf0]  ;;  %v2831_v2 = vld [vmem:[#allocation2 + $0x138] sm:$0xf0] }
  0x5e   :  { %1058 = vmatpush.bf16.msrb.mxu3 %v2746_v23  ;;  %866 = vmatmul.bf16.gmra.mxu0 %v4155_v36  ;;  %v2978_v23 = vor.u32 %v3645_v20, %v2975_v21  ;;  %v4217_v61 = vor.u32 %v3549_v58, %v2599_v59  ;;  %v3657_v3 = vld [vmem:[#allocation2 + $0x2b4] sm:$0xf]  ;;  %v3023_v4 = vld [vmem:[#allocation2 + $0x2b8] sm:$0xf0]  ;;  %v3639_v9 = vld [vmem:[#allocation2 + $0x224] sm:$0xf] }
  0x5f   :  { %895 = vmatmul.bf16.gmra.mxu1 %v4157_v37  ;;  %1080 = vmatpush.bf16.msra.mxu0 %v2866_v49  ;;  %v2906_v49 = vor.u32 %v3627_v44, %v2903_v47  ;;  %v3026_v6 = vor.u32 %v3657_v3, %v3023_v4  ;;  %v2895_v8 = vld [vmem:[#allocation2 + $0x1b8] sm:$0xf0]  ;;  %v2951_v11 = vld [vmem:[#allocation2 + $0x228] sm:$0xf0]  ;;  %v3607_v12 = vld [vmem:[#allocation2 + $0x124] sm:$0xf] }
  0x60   :  { %924 = vmatmul.bf16.gmra.mxu2 %v4159_v38  ;;  %1109 = vmatpush.bf16.msra.mxu1 %v2930_v60  ;;  %v2823_v13 = vld [vmem:[#allocation2 + $0x128] sm:$0xf0]  ;;  %v3655_v14 = vld [vmem:[#allocation2 + $0x2a4] sm:$0xf]  ;;  %v2621_v24 = vld [vmem:[%s4659_s0 + $0x40] sm:$0xf] }
  0x61   :  { %953 = vmatmul.bf16.gmra.mxu3 %v4161_v39  ;;  %1138 = vmatpush.bf16.msra.mxu2 %v2994_v43  ;;  %v3031_v43 = vld [vmem:[#allocation2 + $0x2c8] sm:$0xf0]  ;;  %v3623_v20 = vld [vmem:[#allocation2 + $0x1a4] sm:$0xf]  ;;  %v3558_v25 = vld [vmem:[%s4659_s0 + $0x54] sm:$0xf0] }
  0x62   :  { %1167 = vmatpush.bf16.msra.mxu3 %v3058_v52  ;;  %v3034_v46 = vor.u32 %v3659_v42, %v3031_v43  ;;  %v2597_v52 = vld [vmem:[%s4659_s0 + $0x10] sm:$0xf]  ;;  %v3015_v15 = vld [vmem:[#allocation2 + $0x2a8] sm:$0xf0]  ;;  %v3555_v26 = vld [vmem:[%s4659_s0 + $0x44] sm:$0xf] }
  0x63   :  { %1081 = vmatpush.bf16.msra.mxu0 %v2858_v1  ;;  %v4215_v60 = vor.u32 %v3552_v55, %v2597_v52  ;;  %v2962_v1 = vor.u32 %v3641_v62, %v2959_v63  ;;  %v3018_v21 = vor.u32 %v3655_v14, %v3015_v15  ;;  %v2887_v22 = vld [vmem:[#allocation2 + $0x1a8] sm:$0xf0]  ;;  %v3637_v30 = vld [vmem:[#allocation2 + $0x214] sm:$0xf]  ;;  %v2943_v31 = vld [vmem:[#allocation2 + $0x218] sm:$0xf0] }
  0x64   :  { %1110 = vmatpush.bf16.msra.mxu1 %v2922_v7  ;;  %v3625_v7 = vld [vmem:[#allocation2 + $0x1b4] sm:$0xf]  ;;  %v2946_v33 = vor.u32 %v3637_v30, %v2943_v31  ;;  %v2815_v34 = vld [vmem:[#allocation2 + $0x118] sm:$0xf0]  ;;  %v3603_v52 = vld [vmem:[#allocation2 + $0x104] sm:$0xf] }
  0x65   :  { %1139 = vmatpush.bf16.msra.mxu2 %v2986_v0  ;;  %v3609_v0 = vld [vmem:[#allocation2 + $0x134] sm:$0xf]  ;;  %v2898_v10 = vor.u32 %v3625_v7, %v2895_v8  ;;  %v2879_v44 = vld [vmem:[#allocation2 + $0x198] sm:$0xf0]  ;;  %v2807_v55 = vld [vmem:[#allocation2 + $0x108] sm:$0xf0] }
  0x66   :  { %1168 = vmatpush.bf16.msra.mxu3 %v3050_v5  ;;  %v2834_v5 = vor.u32 %v3609_v0, %v2831_v2  ;;  %v3653_v35 = vld [vmem:[#allocation2 + $0x294] sm:$0xf]  ;;  %v3651_v58 = vld [vmem:[#allocation2 + $0x284] sm:$0xf]  ;;  %v2999_v59 = vld [vmem:[#allocation2 + $0x288] sm:$0xf0] }
  0x67   :  { %1082 = vmatpush.bf16.msra.mxu0 %v2850_v27  ;;  %v2623_v27 = vld [vmem:[%s4659_s0 + $0x58] sm:$0xf0]  ;;  %v3621_v43 = vld [vmem:[#allocation2 + $0x194] sm:$0xf]  ;;  %v3619_v62 = vld [vmem:[#allocation2 + $0x184] sm:$0xf]  ;;  %v3002_v63 = vor.u32 %v3651_v58, %v2999_v59 }
  0x68   :  { %1111 = vmatpush.bf16.msra.mxu1 %v2914_v32  ;;  %v4237_v29 = vor.u32 %v3555_v26, %v2623_v27  ;;  %v3605_v32 = vld [vmem:[#allocation2 + $0x114] sm:$0xf]  ;;  %v2882_v47 = vor.u32 %v3621_v43, %v2879_v44  ;;  %v2871_v0 = vld [vmem:[#allocation2 + $0x188] sm:$0xf0]  ;;  %v2645_v2 = vld [vmem:[%s4659_s0 + $0x70] sm:$0xf] }
  0x69   :  { %1140 = vmatpush.bf16.msra.mxu2 %v2978_v23  ;;  %v2890_v23 = vor.u32 %v3623_v20, %v2887_v22  ;;  %v3564_v3 = vld [vmem:[%s4659_s0 + $0x84] sm:$0xf0]  ;;  %v3561_v4 = vld [vmem:[%s4659_s0 + $0x74] sm:$0xf]  ;;  %v2669_v8 = vld [vmem:[%s4659_s0 + $0xa0] sm:$0xf] }
  0x6a   :  { %1169 = vmatpush.bf16.msra.mxu3 %v3042_v28  ;;  %v4235_v28 = vor.u32 %v3558_v25, %v2621_v24  ;;  %vm1476_vm0 = vcmask 523264   ;;  %s2563_s21 = sshll.u32 %s4668_s9, 4  ;;  %s2564_s21 = int_to_ptr.hbm [resolvable:$true] %s2563_s21 }
  0x6b   :  { %1083 = vmatpush.bf16.msra.mxu0 %v2842_v41  ;;  %v2818_v41 = vor.u32 %v3605_v32, %v2815_v34 }
  0x6c   :  { %1112 = vmatpush.bf16.msra.mxu1 %v2906_v49  ;;  %v2935_v49 = vld [vmem:[#allocation2 + $0x208] sm:$0xf0] }
  0x6d   :  { %1141 = vmatpush.bf16.msra.mxu2 %v2970_v40  ;;  %v3007_v40 = vld [vmem:[#allocation2 + $0x298] sm:$0xf0] }
  0x6e   :  { %871 = vmatmul.bf16.gmra.mxu0 %v4191_v16  ;;  %1170 = vmatpush.bf16.msra.mxu3 %v3034_v46  ;;  %v3010_v42 = vor.u32 %v3653_v35, %v3007_v40  ;;  %v3635_v46 = vld [vmem:[#allocation2 + $0x204] sm:$0xf]  ;;  %v3670_v35 = vld [vmem:[%s4662_s3 + $0x18] sm:$0xff] }
  0x6f   :  { %900 = vmatmul.bf16.gmra.mxu1 %v4193_v17  ;;  %1084 = vmatpush.bf16.msra.mxu0 %v2834_v5  ;;  %v2647_v5 = vld [vmem:[%s4659_s0 + $0x88] sm:$0xf0] }
  0x70   :  { %929 = vmatmul.bf16.gmra.mxu2 %v4195_v18  ;;  %1113 = vmatpush.bf16.msra.mxu1 %v2898_v10  ;;  %v2650_v7 = vor.u32 %v3561_v4, %v2647_v5  ;;  %v3567_v10 = vld [vmem:[%s4659_s0 + $0xa4] sm:$0xf] }
  0x71   :  { %958 = vmatmul.bf16.gmra.mxu3 %v4197_v19  ;;  %1142 = vmatpush.bf16.msra.mxu2 %v2962_v1  ;;  %v2874_v1 = vor.u32 %v3619_v62, %v2871_v0  ;;  %v3682_v0 = vld [vmem:[%s4662_s3 + $0x78] sm:$0xff] }
  0x72   :  { %1171 = vmatpush.bf16.msra.mxu3 %v3026_v6  ;;  %v2646_v6 = vor.u32 %v3564_v3, %v2645_v2 }
  0x74   :  { %1114 = vmatpush.bf16.msra.mxu1 %v2890_v23 }
  0x76   :  { %1172 = vmatpush.bf16.msra.mxu3 %v3018_v21 }
  0x78   :  { %1115 = vmatpush.bf16.msra.mxu1 %v2882_v47 }
  0x7a   :  { %1173 = vmatpush.bf16.msra.mxu3 %v3010_v42 }
  0x7c   :  { %1116 = vmatpush.bf16.msra.mxu1 %v2874_v1 }
  0x7e   :  { %972 = vmatmul.bf16.vlgmr.msrb.gmra.mxu0 %v4215_v60  ;;  %1174 = vmatpush.bf16.msra.mxu3 %v3002_v63 }
  0x7f   :  { %1001 = vmatmul.bf16.vlgmr.msrb.gmra.mxu1 %v4217_v61 }
  0x80   :  { %1030 = vmatmul.bf16.vlgmr.msrb.gmra.mxu2 %v4083_v48  ;;  %v2954_v48 = vor.u32 %v3639_v9, %v2951_v11  ;;  %v3570_v9 = vld [vmem:[%s4659_s0 + $0xb4] sm:$0xf0]  ;;  %v2671_v11 = vld [vmem:[%s4659_s0 + $0xb8] sm:$0xf0]  ;;  %1381 = vmatpush.bf16.msrb.mxu1 %v3682_v0 }
  0x81   :  { %1059 = vmatmul.bf16.vlgmr.msrb.gmra.mxu3 %v4085_v53  ;;  %v2826_v53 = vor.u32 %v3607_v12, %v2823_v13  ;;  %v4269_v12 = vor.u32 %v3570_v9, %v2669_v8 }
  0x82   :  { %1143 = vmatpush.bf16.msra.mxu2 %v2954_v48 }
  0x83   :  { %1085 = vmatpush.bf16.msra.mxu0 %v2826_v53 }
  0x86   :  { %1144 = vmatpush.bf16.msra.mxu2 %v2946_v33 }
  0x87   :  { %1086 = vmatpush.bf16.msra.mxu0 %v2818_v41  ;;  %v3669_v41 = vld [vmem:[%s4662_s3 + $0x10] sm:$0xff] }
  0x8e   :  { %977 = vmatmul.bf16.gmra.mxu0 %v4235_v28 }
  0x8f   :  { %1006 = vmatmul.bf16.gmra.mxu1 %v4237_v29 }
  0x90   :  { %1035 = vmatmul.bf16.gmra.mxu2 %v4119_v45  ;;  %v2938_v45 = vor.u32 %v3635_v46, %v2935_v49 }
  0x91   :  { %1064 = vmatmul.bf16.gmra.mxu3 %v4121_v50  ;;  %v2810_v50 = vor.u32 %v3603_v52, %v2807_v55 }
  0x92   :  { %1145 = vmatpush.bf16.msra.mxu2 %v2938_v45 }
  0x93   :  { %1087 = vmatpush.bf16.msra.mxu0 %v2810_v50 }
  0x9e   :  { %982 = vmatmul.bf16.gmra.mxu0 %v2646_v6 }
  0x9f   :  { %1011 = vmatmul.bf16.gmra.mxu1 %v2650_v7 }
  0xa0   :  { %1040 = vmatmul.bf16.gmra.mxu2 %v4155_v36  ;;  %v4271_v36 = vor.u32 %v3567_v10, %v2671_v11 }
  0xa1   :  { %1069 = vmatmul.bf16.gmra.mxu3 %v4157_v37  ;;  %v4277_v37 = vld [vmem:[#allocation5] sm:$0x3] }
  0xa2   :  { %v4280_v13 = vperm.slane %v4277_v37, 0  ;;  %v4391_v9 = vperm.slane %v4277_v37, 1 }
  0xae   :  { %987 = vmatmul.bf16.gmra.mxu0 %v4269_v12 }
  0xaf   :  { %1016 = vmatmul.bf16.gmra.mxu1 %v4271_v36 }
  0xb0   :  { %1045 = vmatmul.bf16.gmra.mxu2 %v4191_v16 }
  0xb1   :  { %1074 = vmatmul.bf16.gmra.mxu3 %v4193_v17 }
  0xbb   :  { %v857_v48 = vpop.f32.mrf.mxu0 }
  0xbc   :  { %v858_v53 = vadd.f32 %v857_v48, %v4280_v13  ;;  %v886_v14 = vpop.f32.mrf.mxu1 }
  0xbe   :  { %v4283_v15 = vadd.f32 %v886_v14, %v858_v53  ;;  %1088 = vmatmul.bf16.vlgmr.msra.gmra.mxu0 %v4087_v54 }
  0xbf   :  { %1117 = vmatmul.bf16.vlgmr.msra.gmra.mxu1 %v4089_v57  ;;  %v3674_v57 = vld [vmem:[%s4662_s3 + $0x38] sm:$0xff] }
  0xc0   :  { %1146 = vmatmul.bf16.vlgmr.msra.gmra.mxu2 %v4215_v60  ;;  %1352 = vmatpush.bf16.msrb.mxu0 %v3674_v57 }
  0xc1   :  { %1175 = vmatmul.bf16.vlgmr.msra.gmra.mxu3 %v4217_v61  ;;  %v3673_v61 = vld [vmem:[%s4662_s3 + $0x30] sm:$0xff] }
  0xc3   :  { %v4289_v16 = vpop.f32.mrf.mxu2  ;;  %v859_v20 = vpop.f32.mrf.mxu0 }
  0xc4   :  { %v4291_v17 = vpop.f32.mrf.mxu3  ;;  %v4293_v21 = vpop.f32.mrf.mxu1  ;;  %1353 = vmatpush.bf16.msrb.mxu0 %v3673_v61 }
  0xcb   :  { %v4295_v22 = vpop.f32.mrf.mxu2  ;;  %v862_v24 = vpop.f32.mrf.mxu0 }
  0xcc   :  { %v4297_v23 = vpop.f32.mrf.mxu3  ;;  %v863_v54 = vadd.f32 %v862_v24, %v4280_v13  ;;  %v891_v25 = vpop.f32.mrf.mxu1 }
  0xce   :  { %v4303_v60 = vadd.f32 %v891_v25, %v863_v54  ;;  %1093 = vmatmul.bf16.gmra.mxu0 %v4123_v51  ;;  %v3672_v51 = vld [vmem:[%s4662_s3 + $0x28] sm:$0xff] }
  0xcf   :  { %1122 = vmatmul.bf16.gmra.mxu1 %v4125_v56  ;;  %1354 = vmatpush.bf16.msrb.mxu0 %v3672_v51  ;;  %v3671_v56 = vld [vmem:[%s4662_s3 + $0x20] sm:$0xff] }
  0xd0   :  { %1151 = vmatmul.bf16.gmra.mxu2 %v4235_v28 }
  0xd1   :  { %1180 = vmatmul.bf16.gmra.mxu3 %v4237_v29 }
  0xd3   :  { %v4312_v26 = vpop.f32.mrf.mxu2  ;;  %v4316_v30 = vpop.f32.mrf.mxu0  ;;  %1355 = vmatpush.bf16.msrb.mxu0 %v3671_v56 }
  0xd4   :  { %v4314_v27 = vpop.f32.mrf.mxu3  ;;  %v4318_v31 = vpop.f32.mrf.mxu1  ;;  %v921_v24 = vadd.f32 %v4312_v26, %v4303_v60 }
  0xd7   :  { %1356 = vmatpush.bf16.msrb.mxu0 %v3670_v35 }
  0xdb   :  { %v4326_v28 = vpop.f32.mrf.mxu2  ;;  %v867_v32 = vpop.f32.mrf.mxu0  ;;  %1357 = vmatpush.bf16.msrb.mxu0 %v3669_v41 }
  0xdc   :  { %v4328_v29 = vpop.f32.mrf.mxu3  ;;  %v868_v33 = vadd.f32 %v867_v32, %v4280_v13  ;;  %v896_v34 = vpop.f32.mrf.mxu1  ;;  %v3679_v32 = vld [vmem:[%s4662_s3 + $0x60] sm:$0xff] }
  0xde   :  { %v4334_v40 = vadd.f32 %v896_v34, %v868_v33  ;;  %1098 = vmatmul.bf16.gmra.mxu0 %v4159_v38  ;;  %v3668_v38 = vld [vmem:[%s4662_s3 + $0x8] sm:$0xff] }
  0xdf   :  { %1127 = vmatmul.bf16.gmra.mxu1 %v4161_v39  ;;  %1358 = vmatpush.bf16.msrb.mxu0 %v3668_v38  ;;  %v3667_v39 = vld [vmem:[%s4662_s3] sm:$0xff] }
  0xe0   :  { %1156 = vmatmul.bf16.gmra.mxu2 %v2646_v6  ;;  %v3681_v6 = vld [vmem:[%s4662_s3 + $0x70] sm:$0xff] }
  0xe1   :  { %1185 = vmatmul.bf16.gmra.mxu3 %v2650_v7  ;;  %1382 = vmatpush.bf16.msrb.mxu1 %v3681_v6 }
  0xe3   :  { %v4341_v42 = vpop.f32.mrf.mxu2  ;;  %v4345_v44 = vpop.f32.mrf.mxu0  ;;  %1359 = vmatpush.bf16.msrb.mxu0 %v3667_v39 }
  0xe4   :  { %v4343_v43 = vpop.f32.mrf.mxu3  ;;  %v4347_v46 = vpop.f32.mrf.mxu1 }
  0xeb   :  { %v4355_v47 = vpop.f32.mrf.mxu2  ;;  %v872_v52 = vpop.f32.mrf.mxu0 }
  0xec   :  { %v4357_v49 = vpop.f32.mrf.mxu3  ;;  %v873_v55 = vadd.f32 %v872_v52, %v4280_v13  ;;  %v901_v45 = vpop.f32.mrf.mxu1 }
  0xee   :  { %v4360_v50 = vadd.f32 %v901_v45, %v873_v55  ;;  %1103 = vmatmul.bf16.gmra.mxu0 %v4195_v18  ;;  %v860_v18 = vadd.f32 %v859_v20, %v4280_v13 }
  0xef   :  { %1132 = vmatmul.bf16.gmra.mxu1 %v4197_v19  ;;  %v916_v19 = vadd.f32 %v4289_v16, %v4283_v15 }
  0xf0   :  { %1161 = vmatmul.bf16.gmra.mxu2 %v4269_v12  ;;  %v889_v4 = vadd.f32 %v4293_v21, %v860_v18  ;;  %v865_v21 = vadd.f32 %v4316_v30, %v4280_v13  ;;  %v950_v30 = vadd.f32 %v4314_v27, %v921_v24  ;;  %v3678_v27 = vld [vmem:[%s4662_s3 + $0x58] sm:$0xff]  ;;  %v926_v18 = vadd.f32 %v4341_v42, %v4334_v40 }
  0xf1   :  { %1190 = vmatmul.bf16.gmra.mxu3 %v4271_v36  ;;  %v945_v7 = vadd.f32 %v4291_v17, %v916_v19  ;;  %v3680_v17 = vld [vmem:[%s4662_s3 + $0x68] sm:$0xff] }
  0xf2   :  { %v918_v8 = vadd.f32 %v4295_v22, %v889_v4  ;;  %1383 = vmatpush.bf16.msrb.mxu1 %v3680_v17  ;;  %v894_v51 = vadd.f32 %v4318_v31, %v865_v21 }
  0xf3   :  { %v4366_v58 = vpop.f32.mrf.mxu2  ;;  %v4370_v62 = vpop.f32.mrf.mxu0 }
  0xf4   :  { %v4368_v59 = vpop.f32.mrf.mxu3  ;;  %v4372_v63 = vpop.f32.mrf.mxu1  ;;  %v947_v11 = vadd.f32 %v4297_v23, %v918_v8  ;;  %v923_v33 = vadd.f32 %v4326_v28, %v894_v51  ;;  %v870_v28 = vadd.f32 %v4345_v44, %v4280_v13  ;;  %v3677_v8 = vld [vmem:[%s4662_s3 + $0x50] sm:$0xff]  ;;  %v955_v44 = vadd.f32 %v4343_v43, %v926_v18  ;;  %v3676_v43 = vld [vmem:[%s4662_s3 + $0x48] sm:$0xff] }
  0xf6   :  { %1384 = vmatpush.bf16.msrb.mxu1 %v3679_v32  ;;  %v952_v26 = vadd.f32 %v4328_v29, %v923_v33  ;;  %v899_v6 = vadd.f32 %v4347_v46, %v870_v28 }
  0xfa   :  { %1385 = vmatpush.bf16.msrb.mxu1 %v3678_v27 }
  0xfb   :  { %v4380_v1 = vpop.f32.mrf.mxu2  ;;  %v973_v3 = vpop.f32.mrf.mxu0 }
  0xfc   :  { %v4382_v2 = vpop.f32.mrf.mxu3  ;;  %v1002_v5 = vpop.f32.mrf.mxu1  ;;  %v974_v10 = vadd.f32 %v973_v3, %v945_v7 }
  0xfe   :  { %v1003_v14 = vadd.f32 %v1002_v5, %v974_v10  ;;  %v928_v10 = vadd.f32 %v4355_v47, %v899_v6  ;;  %1386 = vmatpush.bf16.msrb.mxu1 %v3677_v8  ;;  %v875_v47 = vadd.f32 %v4370_v62, %v4280_v13  ;;  %v3675_v62 = vld [vmem:[%s4662_s3 + $0x40] sm:$0xff] }
 0x100   :  { %v1196_v22 = vmax.f32 %v1003_v14, 0.0  ;;  %v957_v42 = vadd.f32 %v4357_v49, %v928_v10 }
 0x102   :  { %1387 = vmatpush.bf16.msrb.mxu1 %v3676_v43 }
 0x103   :  { %v1031_v12 = vpop.f32.mrf.mxu2  ;;  %v975_v53 = vpop.f32.mrf.mxu0 }
 0x104   :  { %v1032_v36 = vadd.f32 %v1031_v12, %v4391_v9  ;;  %v1060_v48 = vpop.f32.mrf.mxu3  ;;  %v976_v15 = vadd.f32 %v975_v53, %v947_v11  ;;  %v1004_v16 = vpop.f32.mrf.mxu1 }
 0x106   :  { %v4395_v20 = vadd.f32 %v1060_v48, %v1032_v36  ;;  %v1005_v37 = vadd.f32 %v1004_v16, %v976_v15  ;;  %1388 = vmatpush.bf16.msrb.mxu1 %v3675_v62 }
 0x108   :  { %v1198_v23 = vmax.f32 %v1005_v37, 0.0  ;;  %v931_v37 = vadd.f32 %v4366_v58, %v4360_v50 }
 0x10a   :  { %v1212_v54 = vpack.c.bf16 %v1198_v23, %v1196_v22  ;;  %v960_v51 = vadd.f32 %v4368_v59, %v931_v37 }
 0x10b   :  { %v4404_v25 = vpop.f32.mrf.mxu2  ;;  %v978_v61 = vpop.f32.mrf.mxu0 }
 0x10c   :  { %v4406_v57 = vpop.f32.mrf.mxu3  ;;  %v1007_v56 = vpop.f32.mrf.mxu1  ;;  %1360 = vmatmul.bf16.vlgmr.msrb.gmra.mxu0 %v1212_v54  ;;  %v979_v60 = vadd.f32 %v978_v61, %v950_v30  ;;  %v904_v54 = vadd.f32 %v4372_v63, %v875_v47 }
 0x10e   :  { %v1008_v31 = vadd.f32 %v1007_v56, %v979_v60  ;;  %v933_v13 = vadd.f32 %v4380_v1, %v904_v54 }
 0x110   :  { %v1200_v29 = vmax.f32 %v1008_v31, 0.0  ;;  %v962_v50 = vadd.f32 %v4382_v2, %v933_v13 }
 0x113   :  { %v1036_v34 = vpop.f32.mrf.mxu2  ;;  %v980_v38 = vpop.f32.mrf.mxu0 }
 0x114   :  { %v1037_v35 = vadd.f32 %v1036_v34, %v4391_v9  ;;  %v1065_v41 = vpop.f32.mrf.mxu3  ;;  %v981_v39 = vadd.f32 %v980_v38, %v952_v26  ;;  %v1009_v52 = vpop.f32.mrf.mxu1 }
 0x116   :  { %v4416_v55 = vadd.f32 %v1065_v41, %v1037_v35  ;;  %v1010_v45 = vadd.f32 %v1009_v52, %v981_v39  ;;  %v1034_v52 = vadd.f32 %v4404_v25, %v4391_v9 }
 0x118   :  { %v1202_v0 = vmax.f32 %v1010_v45, 0.0  ;;  %v1063_v28 = vadd.f32 %v4406_v57, %v1034_v52 }
 0x11a   :  { %v1214_v3 = vpack.c.bf16 %v1202_v0, %v1200_v29 }
 0x11b   :  { %v4425_v19 = vpop.f32.mrf.mxu2  ;;  %v983_v5 = vpop.f32.mrf.mxu0 }
 0x11c   :  { %v4427_v4 = vpop.f32.mrf.mxu3  ;;  %v1012_v7 = vpop.f32.mrf.mxu1  ;;  %1365 = vmatmul.bf16.gmra.mxu0 %v1214_v3  ;;  %v984_v40 = vadd.f32 %v983_v5, %v955_v44 }
 0x11e   :  { %v1013_v46 = vadd.f32 %v1012_v7, %v984_v40 }
 0x120   :  { %v1204_v17 = vmax.f32 %v1013_v46, 0.0 }
 0x123   :  { %v1041_v11 = vpop.f32.mrf.mxu2  ;;  %v985_v48 = vpop.f32.mrf.mxu0 }
 0x124   :  { %v1042_v12 = vadd.f32 %v1041_v11, %v4391_v9  ;;  %v1070_v36 = vpop.f32.mrf.mxu3  ;;  %v986_v53 = vadd.f32 %v985_v48, %v957_v42  ;;  %v1014_v14 = vpop.f32.mrf.mxu1 }
 0x126   :  { %v4437_v15 = vadd.f32 %v1070_v36, %v1042_v12  ;;  %v1015_v16 = vadd.f32 %v1014_v14, %v986_v53 }
 0x128   :  { %v1206_v49 = vmax.f32 %v1015_v16, 0.0 }
 0x12a   :  { %v1216_v22 = vpack.c.bf16 %v1206_v49, %v1204_v17 }
 0x12b   :  { %v4446_v21 = vpop.f32.mrf.mxu2  ;;  %v988_v24 = vpop.f32.mrf.mxu0 }
 0x12c   :  { %v4448_v23 = vpop.f32.mrf.mxu3  ;;  %v1017_v61 = vpop.f32.mrf.mxu1  ;;  %1370 = vmatmul.bf16.gmra.mxu0 %v1216_v22  ;;  %v989_v56 = vadd.f32 %v988_v24, %v960_v51 }
 0x12e   :  { %v1018_v63 = vadd.f32 %v1017_v61, %v989_v56 }
 0x130   :  { %v1208_v1 = vmax.f32 %v1018_v63, 0.0 }
 0x133   :  { %v1046_v58 = vpop.f32.mrf.mxu2  ;;  %v990_v33 = vpop.f32.mrf.mxu0 }
 0x134   :  { %v1047_v32 = vadd.f32 %v1046_v58, %v4391_v9  ;;  %v1075_v30 = vpop.f32.mrf.mxu3  ;;  %v991_v60 = vadd.f32 %v990_v33, %v962_v50  ;;  %v1019_v26 = vpop.f32.mrf.mxu1 }
 0x136   :  { %v4458_v34 = vadd.f32 %v1075_v30, %v1047_v32  ;;  %v1020_v59 = vadd.f32 %v1019_v26, %v991_v60 }
 0x138   :  { %v1210_v35 = vmax.f32 %v1020_v59, 0.0 }
 0x13a   :  { %v1218_v38 = vpack.c.bf16 %v1210_v35, %v1208_v1 }
 0x13b   :  { %v4460_v41 = vpop.f32.mrf.mxu2  ;;  %v1089_v39 = vpop.f32.mrf.mxu0 }
 0x13c   :  { %v4462_v31 = vpop.f32.mrf.mxu3  ;;  %v1118_v2 = vpop.f32.mrf.mxu1  ;;  %1375 = vmatmul.bf16.gmra.mxu0 %v1218_v38  ;;  %v1090_v27 = vadd.f32 %v1089_v39, %v4395_v20  ;;  %v1039_v20 = vadd.f32 %v4425_v19, %v4391_v9 }
 0x13e   :  { %v1119_v3 = vadd.f32 %v1118_v2, %v1090_v27  ;;  %v1068_v53 = vadd.f32 %v4427_v4, %v1039_v20 }
 0x143   :  { %v1147_v45 = vpop.f32.mrf.mxu2  ;;  %v1091_v0 = vpop.f32.mrf.mxu0 }
 0x144   :  { %v1176_v29 = vpop.f32.mrf.mxu3  ;;  %v1120_v18 = vpop.f32.mrf.mxu1  ;;  %v1092_v5 = vadd.f32 %v1091_v0, %v1063_v28  ;;  %v1148_v6 = vadd.f32 %v1147_v45, %v1119_v3 }
 0x146   :  { %v1121_v7 = vadd.f32 %v1120_v18, %v1092_v5  ;;  %v1177_v44 = vadd.f32 %v1176_v29, %v1148_v6 }
 0x148   :  { %v1197_v25 = vmax.f32 %v1177_v44, 0.0 }
 0x14b   :  { %v1149_v8 = vpop.f32.mrf.mxu2  ;;  %v1094_v42 = vpop.f32.mrf.mxu0 }
 0x14c   :  { %v1150_v10 = vadd.f32 %v1149_v8, %v1121_v7  ;;  %v1178_v40 = vpop.f32.mrf.mxu3  ;;  %v1123_v11 = vpop.f32.mrf.mxu1  ;;  %v1095_v48 = vadd.f32 %v1094_v42, %v4416_v55  ;;  %v1044_v55 = vadd.f32 %v4446_v21, %v4391_v9  ;;  %v3149_v42 = vld [vmem:[#allocation8 + $0x30] sm:$0xf] }
 0x14e   :  { %v1179_v12 = vadd.f32 %v1178_v40, %v1150_v10  ;;  %v1124_v47 = vadd.f32 %v1123_v11, %v1095_v48  ;;  %v1073_v32 = vadd.f32 %v4448_v23, %v1044_v55  ;;  %v3690_v11 = vld [vmem:[#allocation8 + $0x34] sm:$0xf0]  ;;  %v3683_v55 = vld [vmem:[#allocation8 + $0x4] sm:$0xf] }
 0x14f   :  { %v3150_v20 = vor.u32 %v3690_v11, %v3149_v42 }
 0x150   :  { %v1199_v36 = vmax.f32 %v1179_v12, 0.0 }
 0x151   :  { %1493 = vmatpush.bf16.msrb.mxu2 %v3150_v20 }
 0x152   :  { %v1213_v57 = vpack.c.bf16 %v1199_v36, %v1197_v25 }
 0x153   :  { %v1152_v46 = vpop.f32.mrf.mxu2  ;;  %v1096_v16 = vpop.f32.mrf.mxu0 }
 0x154   :  { %v1181_v14 = vpop.f32.mrf.mxu3  ;;  %1389 = vmatmul.bf16.vlgmr.msrb.gmra.mxu1 %v1213_v57  ;;  %v1125_v43 = vpop.f32.mrf.mxu1  ;;  %v1097_v17 = vadd.f32 %v1096_v16, %v1068_v53  ;;  %v1153_v49 = vadd.f32 %v1152_v46, %v1124_v47  ;;  %v3141_v53 = vld [vmem:[#allocation8 + $0x20] sm:$0xf]  ;;  %v3687_v16 = vld [vmem:[#allocation8 + $0x24] sm:$0xf]  ;;  %v3143_v47 = vld [vmem:[#allocation8 + $0x28] sm:$0xf0] }
 0x156   :  { %v1126_v37 = vadd.f32 %v1125_v43, %v1097_v17  ;;  %v1182_v24 = vadd.f32 %v1181_v14, %v1153_v49  ;;  %v3688_v14 = vld [vmem:[#allocation8 + $0x24] sm:$0xf0]  ;;  %v3146_v17 = vor.u32 %v3687_v16, %v3143_v47  ;;  %v3133_v49 = vld [vmem:[#allocation8 + $0x10] sm:$0xf]  ;;  %v3778_v16 = vld [vmem:[#allocation10 + $0x2b4] sm:$0xf0] }
 0x157   :  { %v3142_v43 = vor.u32 %v3688_v14, %v3141_v53  ;;  %v3501_v14 = vld [vmem:[#allocation10 + $0x2a0] sm:$0xf] }
 0x158   :  { %v1201_v62 = vmax.f32 %v1182_v24, 0.0 }
 0x159   :  { %1494 = vmatpush.bf16.msrb.mxu2 %v3142_v43  ;;  %v3721_v43 = vld [vmem:[#allocation10 + $0xf4] sm:$0xf] }
 0x15b   :  { %v1154_v22 = vpop.f32.mrf.mxu2  ;;  %v1099_v61 = vpop.f32.mrf.mxu0 }
 0x15c   :  { %v1155_v54 = vadd.f32 %v1154_v22, %v1126_v37  ;;  %v1183_v19 = vpop.f32.mrf.mxu3  ;;  %v1128_v51 = vpop.f32.mrf.mxu1  ;;  %v1100_v56 = vadd.f32 %v1099_v61, %v4437_v15  ;;  %v1049_v15 = vadd.f32 %v4460_v41, %v4391_v9  ;;  %v3689_v9 = vld [vmem:[#allocation8 + $0x34] sm:$0xf]  ;;  %v3686_v37 = vld [vmem:[#allocation8 + $0x14] sm:$0xf0]  ;;  %v3125_v61 = vld [vmem:[#allocation8] sm:$0xf] }
 0x15d   :  { %v3685_v22 = vld [vmem:[#allocation8 + $0x14] sm:$0xf]  ;;  %v3134_v24 = vor.u32 %v3686_v37, %v3133_v49  ;;  %v3287_v49 = vld [vmem:[#allocation10 + $0x108] sm:$0xf0] }
 0x15e   :  { %v1184_v13 = vadd.f32 %v1183_v19, %v1155_v54  ;;  %v1129_v60 = vadd.f32 %v1128_v51, %v1100_v56  ;;  %v1078_v18 = vadd.f32 %v4462_v31, %v1049_v15  ;;  %v3135_v54 = vld [vmem:[#allocation8 + $0x18] sm:$0xf0]  ;;  %v3684_v51 = vld [vmem:[#allocation8 + $0x4] sm:$0xf0]  ;;  %v3769_v37 = vld [vmem:[#allocation10 + $0x274] sm:$0xf] }
 0x15f   :  { %v3138_v19 = vor.u32 %v3685_v22, %v3135_v54  ;;  %1495 = vmatpush.bf16.msrb.mxu2 %v3134_v24  ;;  %v3479_v22 = vld [vmem:[#allocation10 + $0x288] sm:$0xf0]  ;;  %v3290_v54 = vor.u32 %v3721_v43, %v3287_v49 }
 0x160   :  { %v1203_v4 = vmax.f32 %v1184_v13, 0.0  ;;  %v3126_v13 = vor.u32 %v3684_v51, %v3125_v61  ;;  %v3724_v61 = vld [vmem:[#allocation10 + $0x104] sm:$0xf0]  ;;  %v3477_v51 = vld [vmem:[#allocation10 + $0x270] sm:$0xf] }
 0x162   :  { %v1215_v50 = vpack.c.bf16 %v1203_v4, %v1201_v62  ;;  %v3127_v62 = vld [vmem:[#allocation8 + $0x8] sm:$0xf0] }
 0x163   :  { %v1157_v58 = vpop.f32.mrf.mxu2  ;;  %v1101_v33 = vpop.f32.mrf.mxu0  ;;  %1496 = vmatpush.bf16.msrb.mxu2 %v3126_v13  ;;  %v3130_v4 = vor.u32 %v3683_v55, %v3127_v62  ;;  %v3482_v55 = vor.u32 %v3769_v37, %v3479_v22 }
 0x164   :  { %v1186_v30 = vpop.f32.mrf.mxu3  ;;  %1394 = vmatmul.bf16.gmra.mxu1 %v1215_v50  ;;  %v1130_v63 = vpop.f32.mrf.mxu1  ;;  %v1102_v26 = vadd.f32 %v1101_v33, %v1073_v32  ;;  %v1158_v59 = vadd.f32 %v1157_v58, %v1129_v60  ;;  %v4480_v32 = vld [vmem:[#allocation7] ss:$0 sm:$0xff] }
 0x166   :  { %v1131_v1 = vadd.f32 %v1130_v63, %v1102_v26  ;;  %v1187_v38 = vadd.f32 %v1186_v30, %v1158_v59 }
 0x168   :  { %v1205_v45 = vmax.f32 %v1187_v38, 0.0 }
 0x16b   :  { %v1159_v35 = vpop.f32.mrf.mxu2  ;;  %v1104_v2 = vpop.f32.mrf.mxu0 }
 0x16c   :  { %v1160_v39 = vadd.f32 %v1159_v35, %v1131_v1  ;;  %v1188_v21 = vpop.f32.mrf.mxu3  ;;  %v1133_v27 = vpop.f32.mrf.mxu1  ;;  %v1105_v28 = vadd.f32 %v1104_v2, %v4458_v34  ;;  %v3151_v34 = vld [vmem:[#allocation8 + $0x38] sm:$0xf0] }
 0x16d   :  { %v3154_v36 = vor.u32 %v3689_v9, %v3151_v34  ;;  %v3525_v9 = vld [vmem:[#allocation10 + $0x2d0] sm:$0xf]  ;;  %v3311_v34 = vld [vmem:[#allocation10 + $0x138] sm:$0xf0] }
 0x16e   :  { %v1189_v52 = vadd.f32 %v1188_v21, %v1160_v39  ;;  %v1134_v6 = vadd.f32 %v1133_v27, %v1105_v28 }
 0x16f   :  { %1522 = vmatpush.bf16.msrb.mxu3 %v3154_v36  ;;  %v3503_v36 = vld [vmem:[#allocation10 + $0x2b8] sm:$0xf0] }
 0x170   :  { %v1207_v23 = vmax.f32 %v1189_v52, 0.0 }
 0x172   :  { %v1217_v29 = vpack.c.bf16 %v1207_v23, %v1205_v45 }
 0x173   :  { %v1162_v0 = vpop.f32.mrf.mxu2  ;;  %v1106_v5 = vpop.f32.mrf.mxu0  ;;  %1523 = vmatpush.bf16.msrb.mxu3 %v3146_v17  ;;  %v3502_v17 = vor.u32 %v3778_v16, %v3501_v14 }
 0x174   :  { %v1191_v3 = vpop.f32.mrf.mxu3  ;;  %1399 = vmatmul.bf16.gmra.mxu1 %v1217_v29  ;;  %v1107_v7 = vadd.f32 %v1106_v5, %v1078_v18  ;;  %v1163_v8 = vadd.f32 %v1162_v0, %v1134_v6  ;;  %v1135_v44 = vpop.f32.mrf.mxu1  ;;  %v3733_v18 = vld [vmem:[#allocation10 + $0x154] sm:$0xf] }
 0x175   :  { %v3781_v5 = vld [vmem:[#allocation10 + $0x2d4] sm:$0xf] }
 0x176   :  { %v1136_v10 = vadd.f32 %v1135_v44, %v1107_v7  ;;  %v1192_v41 = vadd.f32 %v1191_v3, %v1163_v8  ;;  %v3335_v3 = vld [vmem:[#allocation10 + $0x168] sm:$0xf0] }
 0x177   :  { %1524 = vmatpush.bf16.msrb.mxu3 %v3138_v19  ;;  %v3338_v8 = vor.u32 %v3733_v18, %v3335_v3  ;;  %v3527_v44 = vld [vmem:[#allocation10 + $0x2e8] sm:$0xf0]  ;;  %v3285_v19 = vld [vmem:[#allocation10 + $0xf0] sm:$0xf]  ;;  %v3712_v3 = vld [vmem:[#allocation10 + $0xa4] sm:$0xf0] }
 0x178   :  { %v1209_v31 = vmax.f32 %v1192_v41, 0.0  ;;  %v3530_v42 = vor.u32 %v3781_v5, %v3527_v44  ;;  %v3784_v41 = vld [vmem:[#allocation10 + $0x2e4] sm:$0xf0]  ;;  %v3286_v62 = vor.u32 %v3724_v61, %v3285_v19  ;;  %v3237_v18 = vld [vmem:[#allocation10 + $0x90] sm:$0xf] }
 0x179   :  { %2219 = vmatpush.bf16.msra.mxu2 %v3338_v8  ;;  %v3526_v20 = vor.u32 %v3784_v41, %v3525_v9  ;;  %v3703_v8 = vld [vmem:[#allocation10 + $0x64] sm:$0xf]  ;;  %v3215_v44 = vld [vmem:[#allocation10 + $0x78] sm:$0xf0]  ;;  %v3745_v19 = vld [vmem:[#allocation10 + $0x1b4] sm:$0xf] }
 0x17a   :  { %v3407_v41 = vld [vmem:[#allocation10 + $0x1f8] sm:$0xf0]  ;;  %v3383_v61 = vld [vmem:[#allocation10 + $0x1c8] sm:$0xf0] }
 0x17b   :  { %v1164_v40 = vpop.f32.mrf.mxu2  ;;  %1525 = vmatpush.bf16.msrb.mxu3 %v3130_v4  ;;  %2190 = vmatpush.bf16.msra.mxu1 %v3526_v20  ;;  %v3772_v4 = vld [vmem:[#allocation10 + $0x284] sm:$0xf0]  ;;  %v3706_v20 = vld [vmem:[#allocation10 + $0x74] sm:$0xf0] }
 0x17c   :  { %v1165_v12 = vadd.f32 %v1164_v40, %v1136_v10  ;;  %v1193_v25 = vpop.f32.mrf.mxu3  ;;  %v3333_v10 = vld [vmem:[#allocation10 + $0x150] sm:$0xf]  ;;  %v3736_v40 = vld [vmem:[#allocation10 + $0x164] sm:$0xf0] }
 0x17d   :  { %v3334_v11 = vor.u32 %v3736_v40, %v3333_v10 }
 0x17e   :  { %v1194_v57 = vadd.f32 %v1193_v25, %v1165_v12  ;;  %v3727_v12 = vld [vmem:[#allocation10 + $0x124] sm:$0xf] }
 0x17f   :  { %v3775_v25 = vld [vmem:[#allocation10 + $0x2a4] sm:$0xf]  ;;  %2248 = vmatpush.bf16.msra.mxu3 %v3530_v42  ;;  %2161 = vmatpush.bf16.msra.mxu0 %v3334_v11  ;;  %v3238_v42 = vor.u32 %v3712_v3, %v3237_v18 }
 0x180   :  { %v1211_v48 = vmax.f32 %v1194_v57, 0.0  ;;  %v3314_v57 = vor.u32 %v3727_v12, %v3311_v34  ;;  %2191 = vmatpush.bf16.msra.mxu1 %v3502_v17  ;;  %v3751_v11 = vld [vmem:[#allocation10 + $0x1e4] sm:$0xf]  ;;  %v3213_v12 = vld [vmem:[#allocation10 + $0x60] sm:$0xf]  ;;  %v3218_v34 = vor.u32 %v3703_v8, %v3215_v44 }
 0x181   :  { %v3776_v8 = vld [vmem:[#allocation10 + $0x2ac] sm:$0xf]  ;;  %v3511_v44 = vld [vmem:[#allocation10 + $0x2c0] sm:$0xf0] }
 0x182   :  { %v1219_v46 = vpack.c.bf16 %v1211_v48, %v1209_v31  ;;  %v3506_v31 = vor.u32 %v3775_v25, %v3503_v36  ;;  %v3309_v48 = vld [vmem:[#allocation10 + $0x120] sm:$0xf]  ;;  %2220 = vmatpush.bf16.msra.mxu2 %v3314_v57  ;;  %v3754_v36 = vld [vmem:[#allocation10 + $0x1f4] sm:$0xf0]  ;;  %v3697_v57 = vld [vmem:[#allocation10 + $0x34] sm:$0xf] }
 0x183   :  { %v3405_v25 = vld [vmem:[#allocation10 + $0x1e0] sm:$0xf] }
 0x184   :  { %1404 = vmatmul.bf16.gmra.mxu1 %v1219_v46  ;;  %v3730_v46 = vld [vmem:[#allocation10 + $0x134] sm:$0xf0]  ;;  %2249 = vmatpush.bf16.msra.mxu3 %v3506_v31  ;;  %v3191_v31 = vld [vmem:[#allocation10 + $0x48] sm:$0xf0]  ;;  %v3406_v16 = vor.u32 %v3754_v36, %v3405_v25  ;;  %v3722_v25 = vld [vmem:[#allocation10 + $0xfc] sm:$0xf] }
 0x185   :  { %v3310_v53 = vor.u32 %v3730_v46, %v3309_v48  ;;  %v3410_v46 = vor.u32 %v3751_v11, %v3407_v41  ;;  %v3194_v43 = vor.u32 %v3697_v57, %v3191_v31  ;;  %v1430_v11 = vld [vmem:[%s4665_s6] sm:$0x3]  ;;  %v3295_v57 = vld [vmem:[#allocation10 + $0x110] sm:$0xf0]  ;;  %s3987_s6 = smov [#allocation13]  }
 0x186   :  { %2221 = vmatpush.bf16.msra.mxu2 %v3290_v54  ;;  %v3298_v31 = vor.u32 %v3722_v25, %v3295_v57  ;;  %s2561_s18 = sshll.u32 %s3987_s6, 4  ;;  %s2562_s18 = int_to_ptr.vmem [resolvable:$true] %s2561_s18 }
 0x187   :  { %2162 = vmatpush.bf16.msra.mxu0 %v3310_v53  ;;  %v3214_v53 = vor.u32 %v3706_v20, %v3213_v12  ;;  %v3509_v20 = vld [vmem:[#allocation10 + $0x2a8] sm:$0xf] }
 0x188   :  { %2250 = vmatpush.bf16.msra.mxu3 %v3482_v55  ;;  %v3700_v55 = vld [vmem:[#allocation10 + $0x44] sm:$0xf0] }
 0x189   :  { %v1361_v56 = vpop.f32.mrf.mxu0 }
 0x18a   :  { %v1362_v33 = vadd.f32 %v4480_v32, %v1361_v56  ;;  %v3715_v56 = vld [vmem:[#allocation10 + $0xc4] sm:$0xf] }
 0x18b   :  { %2163 = vmatpush.bf16.msra.mxu0 %v3286_v62  ;;  %v3748_v62 = vld [vmem:[#allocation10 + $0x1c4] sm:$0xf0] }
 0x191   :  { %v1363_v50 = vpop.f32.mrf.mxu0 }
 0x192   :  { %v1364_v63 = vadd.f32 %v4480_v32, %v1363_v50  ;;  %v3263_v50 = vld [vmem:[#allocation10 + $0xd8] sm:$0xf0] }
 0x199   :  { %v1366_v30 = vpop.f32.mrf.mxu0 }
 0x19a   :  { %v1367_v2 = vadd.f32 %v4480_v32, %v1366_v30  ;;  %v3478_v30 = vor.u32 %v3772_v4, %v3477_v51  ;;  %v3189_v51 = vld [vmem:[#allocation10 + $0x30] sm:$0xf] }
 0x19b   :  { %v3190_v4 = vor.u32 %v3700_v55, %v3189_v51 }
 0x19c   :  { %2192 = vmatpush.bf16.msra.mxu1 %v3478_v30 }
 0x1a1   :  { %v1368_v38 = vpop.f32.mrf.mxu0 }
 0x1a2   :  { %v1369_v27 = vadd.f32 %v4480_v32, %v1368_v38  ;;  %v3453_v38 = vld [vmem:[#allocation10 + $0x240] sm:$0xf] }
 0x1a9   :  { %v1371_v52 = vpop.f32.mrf.mxu0 }
 0x1aa   :  { %v1372_v47 = vadd.f32 %v4480_v32, %v1371_v52  ;;  %v3709_v52 = vld [vmem:[#allocation10 + $0x94] sm:$0xf] }
 0x1b1   :  { %v1373_v6 = vpop.f32.mrf.mxu0 }
 0x1b2   :  { %v1374_v24 = vadd.f32 %v4480_v32, %v1373_v6  ;;  %v3429_v6 = vld [vmem:[#allocation10 + $0x210] sm:$0xf] }
 0x1d1   :  { %v1390_v58 = vpop.f32.mrf.mxu1 }
 0x1d2   :  { %v1391_v60 = vadd.f32 %v1390_v58, %v1362_v33  ;;  %v3763_v33 = vld [vmem:[#allocation10 + $0x244] sm:$0xf] }
 0x1d4   :  { %v1410_v1 = vmax.f32 %v1391_v60, 0.0  ;;  %v3455_v60 = vld [vmem:[#allocation10 + $0x258] sm:$0xf0] }
 0x1d9   :  { %v1392_v26 = vpop.f32.mrf.mxu1 }
 0x1da   :  { %v1393_v59 = vadd.f32 %v1392_v26, %v1364_v63  ;;  %v3261_v26 = vld [vmem:[#allocation10 + $0xc0] sm:$0xf] }
 0x1dc   :  { %v1411_v35 = vmax.f32 %v1393_v59, 0.0  ;;  %v3718_v59 = vld [vmem:[#allocation10 + $0xd4] sm:$0xf0] }
 0x1de   :  { %v1418_v39 = vpack.c.bf16 %v1411_v35, %v1410_v1  ;;  %v1376_v1 = vpop.f32.mrf.mxu0  ;;  %v3266_v35 = vor.u32 %v3715_v56, %v3263_v50  ;;  %v3691_v50 = vld [vmem:[#allocation10 + $0x4] sm:$0xf] }
 0x1df   :  { %v1377_v14 = vadd.f32 %v4480_v32, %v1376_v1  ;;  %v3357_v1 = vld [vmem:[#allocation10 + $0x180] sm:$0xf] }
 0x1e0   :  { %3155 = vmatmul.msk.bf16.vlgmr.msrb.gmra.mxu2 %vm1476_vm0, %v1418_v39  ;;  %3159 = vmatmul.msk.bf16.vlgmr.msrb.gmra.mxu3 %vm1476_vm0, %v1418_v39  ;;  %v3766_v39 = vld [vmem:[#allocation10 + $0x254] sm:$0xf0] }
 0x1e1   :  { %v1395_v21 = vpop.f32.mrf.mxu1  ;;  %2222 = vmatpush.bf16.msra.mxu2 %v3266_v35  ;;  %v3742_v35 = vld [vmem:[#allocation10 + $0x194] sm:$0xf0] }
 0x1e2   :  { %v1396_v15 = vadd.f32 %v1395_v21, %v1367_v2 }
 0x1e4   :  { %v1412_v28 = vmax.f32 %v1396_v15, 0.0  ;;  %v3458_v15 = vor.u32 %v3763_v33, %v3455_v60  ;;  %v3739_v33 = vld [vmem:[#allocation10 + $0x184] sm:$0xf]  ;;  %v3165_v60 = vld [vmem:[#allocation10] sm:$0xf] }
 0x1e6   :  { %2251 = vmatpush.bf16.msra.mxu3 %v3458_v15  ;;  %v1378_v48 = vpop.f32.mrf.mxu0  ;;  %v3535_v15 = vld [vmem:[#allocation10 + $0x2f0] sm:$0xf0] }
 0x1e9   :  { %v1397_v45 = vpop.f32.mrf.mxu1 }
 0x1ea   :  { %v1398_v23 = vadd.f32 %v1397_v45, %v1369_v27  ;;  %v3239_v27 = vld [vmem:[#allocation10 + $0xa8] sm:$0xf0]  ;;  %v3262_v45 = vor.u32 %v3718_v59, %v3261_v26  ;;  %v3694_v59 = vld [vmem:[#allocation10 + $0x14] sm:$0xf0] }
 0x1eb   :  { %v3242_v5 = vor.u32 %v3709_v52, %v3239_v27  ;;  %v3782_v27 = vld [vmem:[#allocation10 + $0x2dc] sm:$0xf] }
 0x1ec   :  { %v1413_v29 = vmax.f32 %v1398_v23, 0.0  ;;  %v3757_v23 = vld [vmem:[#allocation10 + $0x214] sm:$0xf]  ;;  %2164 = vmatpush.bf16.msra.mxu0 %v3262_v45  ;;  %v3341_v45 = vld [vmem:[#allocation10 + $0x158] sm:$0xf] }
 0x1ed   :  { %2223 = vmatpush.bf16.msra.mxu2 %v3242_v5  ;;  %v3728_v5 = vld [vmem:[#allocation10 + $0x12c] sm:$0xf] }
 0x1ee   :  { %v1419_v0 = vpack.c.bf16 %v1413_v29, %v1412_v28  ;;  %v3454_v29 = vor.u32 %v3766_v39, %v3453_v38  ;;  %v3166_v38 = vor.u32 %v3694_v59, %v3165_v60  ;;  %v3358_v39 = vor.u32 %v3742_v35, %v3357_v1  ;;  %v3463_v60 = vld [vmem:[#allocation10 + $0x260] sm:$0xf0]  ;;  %v3719_v1 = vld [vmem:[#allocation10 + $0xdc] sm:$0xf0] }
 0x1f0   :  { %3156 = vmatmul.msk.bf16.gmra.mxu2 %vm1476_vm0, %v1419_v0  ;;  %3160 = vmatmul.msk.bf16.gmra.mxu3 %vm1476_vm0, %v1419_v0  ;;  %v3431_v0 = vld [vmem:[#allocation10 + $0x228] sm:$0xf0] }
 0x1f1   :  { %v1400_v7 = vpop.f32.mrf.mxu1  ;;  %v3434_v40 = vor.u32 %v3757_v23, %v3431_v0  ;;  %2193 = vmatpush.bf16.msra.mxu1 %v3454_v29  ;;  %2165 = vmatpush.bf16.msra.mxu0 %v3238_v42  ;;  %v3538_v23 = vor.u32 %v3782_v27, %v3535_v15  ;;  %v3533_v29 = vld [vmem:[#allocation10 + $0x2d8] sm:$0xf]  ;;  %v3785_v0 = vld [vmem:[#allocation10 + $0x2ec] sm:$0xf0]  ;;  %v3731_v42 = vld [vmem:[#allocation10 + $0x13c] sm:$0xf0] }
 0x1f2   :  { %v1401_v13 = vadd.f32 %v1400_v7, %v1372_v47  ;;  %v3760_v7 = vld [vmem:[#allocation10 + $0x224] sm:$0xf0]  ;;  %2224 = vmatpush.bf16.msra.mxu2 %v3218_v34  ;;  %v1379_v47 = vadd.f32 %v4480_v32, %v1378_v48  ;;  %v3381_v32 = vld [vmem:[#allocation10 + $0x1b0] sm:$0xf]  ;;  %v3534_v3 = vor.u32 %v3785_v0, %v3533_v29  ;;  %v3779_v34 = vld [vmem:[#allocation10 + $0x2bc] sm:$0xf0] }
 0x1f3   :  { %v3430_v9 = vor.u32 %v3760_v7, %v3429_v6  ;;  %2252 = vmatpush.bf16.msra.mxu3 %v3434_v40  ;;  %v3382_v56 = vor.u32 %v3748_v62, %v3381_v32  ;;  %v3319_v6 = vld [vmem:[#allocation10 + $0x140] sm:$0xf0]  ;;  %v3514_v40 = vor.u32 %v3776_v8, %v3511_v44  ;;  %v3510_v36 = vor.u32 %v3779_v34, %v3509_v20  ;;  %v3247_v15 = vld [vmem:[#allocation10 + $0xb0] sm:$0xf0]  ;;  %v3245_v0 = vld [vmem:[#allocation10 + $0x98] sm:$0xf] }
 0x1f4   :  { %v1414_v21 = vmax.f32 %v1401_v13, 0.0  ;;  %v3386_v13 = vor.u32 %v3745_v19, %v3383_v61  ;;  %v3322_v7 = vor.u32 %v3728_v5, %v3319_v6  ;;  %v4501_v48 = vperm.slane %v1430_v11, 0  ;;  %v3761_v6 = vld [vmem:[#allocation10 + $0x22c] sm:$0xf0]  ;;  %v3223_v8 = vld [vmem:[#allocation10 + $0x80] sm:$0xf0] }
 0x1f5   :  { %2194 = vmatpush.bf16.msra.mxu1 %v3430_v9  ;;  %2166 = vmatpush.bf16.msra.mxu0 %v3214_v53  ;;  %v3770_v53 = vld [vmem:[#allocation10 + $0x27c] sm:$0xf] }
 0x1f6   :  { %2225 = vmatpush.bf16.msra.mxu2 %v3194_v43  ;;  %v3293_v43 = vld [vmem:[#allocation10 + $0xf8] sm:$0xf] }
 0x1f7   :  { %2253 = vmatpush.bf16.msra.mxu3 %v3410_v46  ;;  %v4503_v46 = vperm.slane %v1430_v11, 1 }
 0x1f9   :  { %v1402_v58 = vpop.f32.mrf.mxu1  ;;  %2195 = vmatpush.bf16.msra.mxu1 %v3406_v16  ;;  %2167 = vmatpush.bf16.msra.mxu0 %v3190_v4 }
 0x1fa   :  { %v1403_v63 = vadd.f32 %v1402_v58, %v1374_v24  ;;  %v3167_v58 = vld [vmem:[#allocation10 + $0x18] sm:$0xf0] }
 0x1fb   :  { %2254 = vmatpush.bf16.msra.mxu3 %v3386_v13  ;;  %v3170_v30 = vor.u32 %v3691_v50, %v3167_v58 }
 0x1fc   :  { %v1415_v2 = vmax.f32 %v1403_v63, 0.0  ;;  %v3359_v63 = vld [vmem:[#allocation10 + $0x198] sm:$0xf0] }
 0x1fd   :  { %2196 = vmatpush.bf16.msra.mxu1 %v3382_v56  ;;  %2226 = vmatpush.bf16.msra.mxu2 %v3170_v30  ;;  %v3362_v26 = vor.u32 %v3739_v33, %v3359_v63  ;;  %v3764_v63 = vld [vmem:[#allocation10 + $0x24c] sm:$0xf] }
 0x1fe   :  { %v1420_v28 = vpack.c.bf16 %v1415_v2, %v1414_v21  ;;  %2168 = vmatpush.bf16.msra.mxu0 %v3166_v38  ;;  %v3734_v21 = vld [vmem:[#allocation10 + $0x15c] sm:$0xf]  ;;  %v3343_v2 = vld [vmem:[#allocation10 + $0x170] sm:$0xf0]  ;;  %v3466_v59 = vor.u32 %v3764_v63, %v3463_v60  ;;  %v3692_v63 = vld [vmem:[#allocation10 + $0xc] sm:$0xf] }
 0x1ff   :  { %2255 = vmatpush.bf16.msra.mxu3 %v3362_v26  ;;  %v3346_v52 = vor.u32 %v3734_v21, %v3343_v2  ;;  %v3269_v26 = vld [vmem:[#allocation10 + $0xc8] sm:$0xf]  ;;  %v3767_v2 = vld [vmem:[#allocation10 + $0x25c] sm:$0xf0] }
 0x200   :  { %3157 = vmatmul.msk.bf16.gmra.mxu2 %vm1476_vm0, %v1420_v28  ;;  %3161 = vmatmul.msk.bf16.gmra.mxu3 %vm1476_vm0, %v1420_v28  ;;  %v3737_v28 = vld [vmem:[#allocation10 + $0x16c] sm:$0xf0]  ;;  %v3270_v35 = vor.u32 %v3719_v1, %v3269_v26  ;;  %v3461_v21 = vld [vmem:[#allocation10 + $0x248] sm:$0xf]  ;;  %v3175_v26 = vld [vmem:[#allocation10 + $0x20] sm:$0xf0] }
 0x201   :  { %v1405_v10 = vpop.f32.mrf.mxu1  ;;  %2197 = vmatpush.bf16.msra.mxu1 %v3358_v39  ;;  %2335 = vmatpush.bf16.msrb.mxu2 %v3346_v52  ;;  %v3342_v18 = vor.u32 %v3737_v28, %v3341_v45  ;;  %v3710_v52 = vld [vmem:[#allocation10 + $0x9c] sm:$0xf]  ;;  %v3462_v27 = vor.u32 %v3767_v2, %v3461_v21  ;;  %v3439_v28 = vld [vmem:[#allocation10 + $0x230] sm:$0xf0]  ;;  %v3367_v1 = vld [vmem:[#allocation10 + $0x1a0] sm:$0xf0] }
 0x202   :  { %v1406_v17 = vadd.f32 %v1405_v10, %v1377_v14  ;;  %v3317_v10 = vld [vmem:[#allocation10 + $0x128] sm:$0xf]  ;;  %v3487_v14 = vld [vmem:[#allocation10 + $0x290] sm:$0xf0]  ;;  %v3250_v45 = vor.u32 %v3710_v52, %v3247_v15  ;;  %v3695_v21 = vld [vmem:[#allocation10 + $0x1c] sm:$0xf0] }
 0x203   :  { %2364 = vmatpush.bf16.msrb.mxu3 %v3538_v23  ;;  %2277 = vmatpush.bf16.msrb.mxu0 %v3342_v18  ;;  %v3318_v9 = vor.u32 %v3731_v42, %v3317_v10  ;;  %v3490_v16 = vor.u32 %v3770_v53, %v3487_v14  ;;  %v3758_v23 = vld [vmem:[#allocation10 + $0x21c] sm:$0xf]  ;;  %v3713_v18 = vld [vmem:[#allocation10 + $0xac] sm:$0xf0]  ;;  %v3752_v53 = vld [vmem:[#allocation10 + $0x1ec] sm:$0xf] }
 0x204   :  { %v1416_v22 = vmax.f32 %v1406_v17, 0.0  ;;  %v3485_v17 = vld [vmem:[#allocation10 + $0x278] sm:$0xf]  ;;  %v3442_v29 = vor.u32 %v3758_v23, %v3439_v28  ;;  %v3246_v5 = vor.u32 %v3713_v18, %v3245_v0  ;;  %v3415_v14 = vld [vmem:[#allocation10 + $0x200] sm:$0xf0] }
 0x205   :  { %2306 = vmatpush.bf16.msrb.mxu1 %v3534_v3  ;;  %2336 = vmatpush.bf16.msrb.mxu2 %v3322_v7  ;;  %v3437_v3 = vld [vmem:[#allocation10 + $0x218] sm:$0xf]  ;;  %v3704_v7 = vld [vmem:[#allocation10 + $0x6c] sm:$0xf]  ;;  %v3365_v2 = vld [vmem:[#allocation10 + $0x188] sm:$0xf] }
 0x206   :  { %v3438_v44 = vor.u32 %v3761_v6, %v3437_v3  ;;  %v3226_v10 = vor.u32 %v3704_v7, %v3223_v8 }
 0x207   :  { %2365 = vmatpush.bf16.msrb.mxu3 %v3514_v40  ;;  %2278 = vmatpush.bf16.msrb.mxu0 %v3318_v9 }
 0x209   :  { %v1407_v49 = vpop.f32.mrf.mxu1  ;;  %2307 = vmatpush.bf16.msrb.mxu1 %v3510_v36  ;;  %2337 = vmatpush.bf16.msrb.mxu2 %v3298_v31 }
 0x20a   :  { %v1408_v37 = vadd.f32 %v1407_v49, %v1379_v47  ;;  %v3725_v47 = vld [vmem:[#allocation10 + $0x10c] sm:$0xf0] }
 0x20b   :  { %v3294_v49 = vor.u32 %v3725_v47, %v3293_v43  ;;  %2366 = vmatpush.bf16.msrb.mxu3 %v3490_v16  ;;  %v3221_v16 = vld [vmem:[#allocation10 + $0x68] sm:$0xf]  ;;  %v3418_v43 = vor.u32 %v3752_v53, %v3415_v14  ;;  %v3707_v47 = vld [vmem:[#allocation10 + $0x7c] sm:$0xf0]  ;;  %v3786_v14 = vld [vmem:[#allocation10 + $0x2f4] sm:$0xf0] }
 0x20c   :  { %v1417_v24 = vmax.f32 %v1408_v37, 0.0  ;;  %v3773_v37 = vld [vmem:[#allocation10 + $0x28c] sm:$0xf0]  ;;  %v3541_v53 = vld [vmem:[#allocation10 + $0x2e0] sm:$0xf] }
 0x20d   :  { %2279 = vmatpush.bf16.msrb.mxu0 %v3294_v49 }
 0x20e   :  { %v1421_v54 = vpack.c.bf16 %v1417_v24, %v1416_v22  ;;  %v3716_v22 = vld [vmem:[#allocation10 + $0xcc] sm:$0xf]  ;;  %v3271_v24 = vld [vmem:[#allocation10 + $0xe0] sm:$0xf0] }
 0x20f   :  { %v3274_v19 = vor.u32 %v3716_v22, %v3271_v24  ;;  %2367 = vmatpush.bf16.msrb.mxu3 %v3466_v59  ;;  %v3413_v22 = vld [vmem:[#allocation10 + $0x1e8] sm:$0xf]  ;;  %v3755_v24 = vld [vmem:[#allocation10 + $0x1fc] sm:$0xf0]  ;;  %v3740_v59 = vld [vmem:[#allocation10 + $0x18c] sm:$0xf] }
 0x210   :  { %3158 = vmatmul.msk.bf16.gmra.mxu2 %vm1476_vm0, %v1421_v54  ;;  %3162 = vmatmul.msk.bf16.gmra.mxu3 %vm1476_vm0, %v1421_v54  ;;  %v3486_v54 = vor.u32 %v3773_v37, %v3485_v17  ;;  %v3222_v17 = vor.u32 %v3707_v47, %v3221_v16  ;;  %v3729_v16 = vld [vmem:[#allocation10 + $0x134] sm:$0xf]  ;;  %v3327_v47 = vld [vmem:[#allocation10 + $0x148] sm:$0xf0] }
 0x211   :  { %2338 = vmatpush.bf16.msrb.mxu2 %v3274_v19  ;;  %2280 = vmatpush.bf16.msrb.mxu0 %v3270_v35  ;;  %v3414_v19 = vor.u32 %v3755_v24, %v3413_v22  ;;  %v3178_v35 = vor.u32 %v3692_v63, %v3175_v26  ;;  %v3325_v22 = vld [vmem:[#allocation10 + $0x130] sm:$0xf]  ;;  %v3732_v24 = vld [vmem:[#allocation10 + $0x144] sm:$0xf0] }
 0x212   :  { %2308 = vmatpush.bf16.msrb.mxu1 %v3486_v54  ;;  %v3698_v54 = vld [vmem:[#allocation10 + $0x3c] sm:$0xf]  ;;  %v3517_v26 = vld [vmem:[#allocation10 + $0x2b0] sm:$0xf] }
 0x213   :  { %2368 = vmatpush.bf16.msrb.mxu3 %v3442_v29 }
 0x215   :  { %2339 = vmatpush.bf16.msrb.mxu2 %v3250_v45  ;;  %2281 = vmatpush.bf16.msrb.mxu0 %v3246_v5 }
 0x216   :  { %2309 = vmatpush.bf16.msrb.mxu1 %v3462_v27  ;;  %v3743_v27 = vld [vmem:[#allocation10 + $0x19c] sm:$0xf0] }
 0x217   :  { %2369 = vmatpush.bf16.msrb.mxu3 %v3418_v43  ;;  %v3366_v23 = vor.u32 %v3743_v27, %v3365_v2  ;;  %v3542_v43 = vor.u32 %v3786_v14, %v3541_v53  ;;  %v3301_v2 = vld [vmem:[#allocation10 + $0x100] sm:$0xf]  ;;  %v3714_v53 = vld [vmem:[#allocation10 + $0xb4] sm:$0xf0] }
 0x218   :  { %v3493_v27 = vld [vmem:[#allocation10 + $0x280] sm:$0xf] }
 0x219   :  { %2340 = vmatpush.bf16.msrb.mxu2 %v3226_v10  ;;  %2282 = vmatpush.bf16.msrb.mxu0 %v3222_v17  ;;  %v3777_v17 = vld [vmem:[#allocation10 + $0x2b4] sm:$0xf]  ;;  %v3445_v14 = vld [vmem:[#allocation10 + $0x220] sm:$0xf] }
 0x21a   :  { %2310 = vmatpush.bf16.msrb.mxu1 %v3438_v44 }
 0x21e   :  { %2311 = vmatpush.bf16.msrb.mxu1 %v3414_v19  ;;  %v3326_v19 = vor.u32 %v3732_v24, %v3325_v22  ;;  %v3753_v22 = vld [vmem:[#allocation10 + $0x1f4] sm:$0xf]  ;;  %v3423_v24 = vld [vmem:[#allocation10 + $0x208] sm:$0xf0] }
 0x263   :  { %v1498_v41 = vpop.f32.mrf.mxu2  ;;  %v1527_v12 = vpop.f32.mrf.mxu3 }
 0x264   :  { %v1499_v61 = vadd.f32 %v1498_v41, %v4501_v48  ;;  %v1528_v51 = vadd.f32 %v1527_v12, %v4503_v46 }
 0x266   :  { %v1547_v4 = vmax.f32 %v1499_v61, 0.0  ;;  %v1548_v56 = vmax.f32 %v1528_v51, 0.0  ;;  %v3199_v61 = vld [vmem:[#allocation10 + $0x50] sm:$0xf0]  ;;  %v3746_v51 = vld [vmem:[#allocation10 + $0x1bc] sm:$0xf] }
 0x26b   :  { %v1500_v13 = vpop.f32.mrf.mxu2  ;;  %v1529_v55 = vpop.f32.mrf.mxu3 }
 0x26c   :  { %v1501_v32 = vadd.f32 %v1500_v13, %v4501_v48  ;;  %v1530_v62 = vadd.f32 %v1529_v55, %v4503_v46  ;;  %v3391_v13 = vld [vmem:[#allocation10 + $0x1d0] sm:$0xf0]  ;;  %v3202_v55 = vor.u32 %v3698_v54, %v3199_v61 }
 0x26e   :  { %v1549_v50 = vmax.f32 %v1501_v32, 0.0  ;;  %v1550_v58 = vmax.f32 %v1530_v62, 0.0  ;;  %v3394_v32 = vor.u32 %v3746_v51, %v3391_v13  ;;  %v3197_v62 = vld [vmem:[#allocation10 + $0x38] sm:$0xf]  ;;  %2341 = vmatpush.bf16.msrb.mxu2 %v3202_v55 }
 0x270   :  { %v4509_v30 = vpack.c.bf16 %v1549_v50, %v1547_v4  ;;  %v4511_v33 = vpack.c.bf16 %v1550_v58, %v1548_v56  ;;  %v3701_v4 = vld [vmem:[#allocation10 + $0x4c] sm:$0xf0]  ;;  %v3389_v56 = vld [vmem:[#allocation10 + $0x1b8] sm:$0xf]  ;;  %2370 = vmatpush.bf16.msrb.mxu3 %v3394_v32 }
 0x271   :  { %v3198_v50 = vor.u32 %v3701_v4, %v3197_v62  ;;  %v3749_v58 = vld [vmem:[#allocation10 + $0x1cc] sm:$0xf0] }
 0x272   :  { %2169 = vmatmul.bf16.vlgmr.msra.gmra.mxu0 %v4509_v30  ;;  %2198 = vmatmul.bf16.vlgmr.msra.gmra.mxu1 %v4511_v33  ;;  %v3390_v60 = vor.u32 %v3749_v58, %v3389_v56 }
 0x273   :  { %2227 = vmatmul.bf16.vlgmr.msra.gmra.mxu2 %v4509_v30  ;;  %2256 = vmatmul.bf16.vlgmr.msra.gmra.mxu3 %v4511_v33  ;;  %v1503_v38 = vpop.f32.mrf.mxu2  ;;  %v1532_v39 = vpop.f32.mrf.mxu3 }
 0x274   :  { %v1504_v40 = vadd.f32 %v1503_v38, %v4501_v48  ;;  %v1533_v42 = vadd.f32 %v1532_v39, %v4503_v46  ;;  %2283 = vmatpush.bf16.msrb.mxu0 %v3198_v50  ;;  %v3370_v38 = vor.u32 %v3740_v59, %v3367_v1  ;;  %v3173_v39 = vld [vmem:[#allocation10 + $0x8] sm:$0xf]  ;;  %2312 = vmatpush.bf16.msrb.mxu1 %v3390_v60  ;;  %v3723_v59 = vld [vmem:[#allocation10 + $0x104] sm:$0xf]  ;;  %v3303_v1 = vld [vmem:[#allocation10 + $0x118] sm:$0xf0] }
 0x275   :  { %v3174_v52 = vor.u32 %v3695_v21, %v3173_v39  ;;  %2342 = vmatpush.bf16.msrb.mxu2 %v3178_v35  ;;  %v3771_v35 = vld [vmem:[#allocation10 + $0x284] sm:$0xf]  ;;  %v3306_v39 = vor.u32 %v3723_v59, %v3303_v1  ;;  %v3702_v59 = vld [vmem:[#allocation10 + $0x54] sm:$0xf0] }
 0x276   :  { %v1551_v20 = vmax.f32 %v1504_v40, 0.0  ;;  %v1552_v34 = vmax.f32 %v1533_v42, 0.0  ;;  %2371 = vmatpush.bf16.msrb.mxu3 %v3370_v38  ;;  %v3735_v42 = vld [vmem:[#allocation10 + $0x164] sm:$0xf]  ;;  %v3495_v38 = vld [vmem:[#allocation10 + $0x298] sm:$0xf0] }
 0x277   :  { %v3498_v21 = vor.u32 %v3771_v35, %v3495_v38  ;;  %v3750_v35 = vld [vmem:[#allocation10 + $0x1d4] sm:$0xf0]  ;;  %v3693_v38 = vld [vmem:[#allocation10 + $0x14] sm:$0xf] }
 0x278   :  { %2284 = vmatpush.bf16.msrb.mxu0 %v3174_v52  ;;  %2313 = vmatpush.bf16.msrb.mxu1 %v3366_v23  ;;  %v3726_v52 = vld [vmem:[#allocation10 + $0x114] sm:$0xf0]  ;;  %v3717_v23 = vld [vmem:[#allocation10 + $0xd4] sm:$0xf] }
 0x27b   :  { %v1505_v11 = vpop.f32.mrf.mxu2  ;;  %v1534_v9 = vpop.f32.mrf.mxu3 }
 0x27c   :  { %v1506_v41 = vadd.f32 %v1505_v11, %v4501_v48  ;;  %v1535_v12 = vadd.f32 %v1534_v9, %v4503_v46  ;;  %v3351_v11 = vld [vmem:[#allocation10 + $0x178] sm:$0xf0]  ;;  %v3783_v9 = vld [vmem:[#allocation10 + $0x2e4] sm:$0xf]  ;;  %2422 = vmatpush.bf16.msra.mxu1 %v3542_v43  ;;  %v3762_v43 = vld [vmem:[#allocation10 + $0x234] sm:$0xf0] }
 0x27e   :  { %v1553_v25 = vmax.f32 %v1506_v41, 0.0  ;;  %v1554_v36 = vmax.f32 %v1535_v12, 0.0  ;;  %v3354_v41 = vor.u32 %v3735_v42, %v3351_v11  ;;  %v3543_v12 = vld [vmem:[#allocation10 + $0x2f8] sm:$0xf0]  ;;  %v3768_v42 = vld [vmem:[#allocation10 + $0x264] sm:$0xf0] }
 0x27f   :  { %v3711_v11 = vld [vmem:[#allocation10 + $0xa4] sm:$0xf] }
 0x280   :  { %v4521_v57 = vpack.c.bf16 %v1553_v25, %v1551_v20  ;;  %v4523_v31 = vpack.c.bf16 %v1554_v36, %v1552_v34  ;;  %v3349_v20 = vld [vmem:[#allocation10 + $0x160] sm:$0xf]  ;;  %v3738_v34 = vld [vmem:[#allocation10 + $0x174] sm:$0xf0]  ;;  %v3546_v25 = vor.u32 %v3783_v9, %v3543_v12  ;;  %2451 = vmatpush.bf16.msra.mxu2 %v3354_v41  ;;  %v3255_v41 = vld [vmem:[#allocation10 + $0xb8] sm:$0xf0] }
 0x281   :  { %v3350_v36 = vor.u32 %v3738_v34, %v3349_v20  ;;  %v3759_v12 = vld [vmem:[#allocation10 + $0x224] sm:$0xf]  ;;  %v3447_v20 = vld [vmem:[#allocation10 + $0x238] sm:$0xf0]  ;;  %v3258_v34 = vor.u32 %v3711_v11, %v3255_v41 }
 0x282   :  { %2174 = vmatmul.bf16.gmra.mxu0 %v4521_v57  ;;  %2203 = vmatmul.bf16.gmra.mxu1 %v4523_v31 }
 0x283   :  { %2232 = vmatmul.bf16.gmra.mxu2 %v4521_v57  ;;  %2261 = vmatmul.bf16.gmra.mxu3 %v4523_v31  ;;  %v1508_v49 = vpop.f32.mrf.mxu2  ;;  %v1537_v37 = vpop.f32.mrf.mxu3 }
 0x284   :  { %v1509_v15 = vadd.f32 %v1508_v49, %v4501_v48  ;;  %v1538_v45 = vadd.f32 %v1537_v37, %v4503_v46  ;;  %2480 = vmatpush.bf16.msra.mxu3 %v3546_v25  ;;  %2393 = vmatpush.bf16.msra.mxu0 %v3350_v36  ;;  %v3330_v49 = vor.u32 %v3729_v16, %v3327_v47  ;;  %v3519_v37 = vld [vmem:[#allocation10 + $0x2c8] sm:$0xf0]  ;;  %v3253_v36 = vld [vmem:[#allocation10 + $0xa0] sm:$0xf]  ;;  %v3705_v47 = vld [vmem:[#allocation10 + $0x74] sm:$0xf] }
 0x285   :  { %v3522_v54 = vor.u32 %v3777_v17, %v3519_v37  ;;  %v3450_v25 = vor.u32 %v3759_v12, %v3447_v20  ;;  %v3254_v16 = vor.u32 %v3714_v53, %v3253_v36  ;;  %v3231_v17 = vld [vmem:[#allocation10 + $0x88] sm:$0xf0] }
 0x286   :  { %v1555_v3 = vmax.f32 %v1509_v15, 0.0  ;;  %v1556_v5 = vmax.f32 %v1538_v45, 0.0  ;;  %2452 = vmatpush.bf16.msra.mxu2 %v3330_v49  ;;  %v3302_v15 = vor.u32 %v3726_v52, %v3301_v2  ;;  %v3774_v45 = vld [vmem:[#allocation10 + $0x294] sm:$0xf0]  ;;  %v3446_v49 = vor.u32 %v3762_v43, %v3445_v14  ;;  %v3741_v52 = vld [vmem:[#allocation10 + $0x194] sm:$0xf] }
 0x287   :  { %v3234_v37 = vor.u32 %v3705_v47, %v3231_v17 }
 0x288   :  { %2481 = vmatpush.bf16.msra.mxu3 %v3522_v54  ;;  %2394 = vmatpush.bf16.msra.mxu0 %v3326_v19  ;;  %v3229_v54 = vld [vmem:[#allocation10 + $0x70] sm:$0xf]  ;;  %v3426_v19 = vor.u32 %v3753_v22, %v3423_v24 }
 0x28a   :  { %2453 = vmatpush.bf16.msra.mxu2 %v3306_v39  ;;  %v3183_v39 = vld [vmem:[#allocation10 + $0x28] sm:$0xf0] }
 0x28b   :  { %v1510_v28 = vpop.f32.mrf.mxu2  ;;  %v1539_v29 = vpop.f32.mrf.mxu3  ;;  %v3186_v2 = vor.u32 %v3693_v38, %v3183_v39 }
 0x28c   :  { %v1511_v0 = vadd.f32 %v1510_v28, %v4501_v48  ;;  %v1540_v18 = vadd.f32 %v1539_v29, %v4503_v46  ;;  %v3279_v28 = vld [vmem:[#allocation10 + $0xe8] sm:$0xf0]  ;;  %2482 = vmatpush.bf16.msra.mxu3 %v3498_v21  ;;  %v3494_v29 = vor.u32 %v3774_v45, %v3493_v27  ;;  %2395 = vmatpush.bf16.msra.mxu0 %v3302_v15  ;;  %v3181_v45 = vld [vmem:[#allocation10 + $0x10] sm:$0xf] }
 0x28d   :  { %v3375_v27 = vld [vmem:[#allocation10 + $0x1a8] sm:$0xf0] }
 0x28e   :  { %v1557_v6 = vmax.f32 %v1511_v0, 0.0  ;;  %v1558_v7 = vmax.f32 %v1540_v18, 0.0  ;;  %v3282_v0 = vor.u32 %v3717_v23, %v3279_v28  ;;  %v3765_v18 = vld [vmem:[#allocation10 + $0x254] sm:$0xf]  ;;  %v3378_v15 = vor.u32 %v3741_v52, %v3375_v27  ;;  %v3696_v23 = vld [vmem:[#allocation10 + $0x24] sm:$0xf0] }
 0x28f   :  { %v3373_v28 = vld [vmem:[#allocation10 + $0x190] sm:$0xf] }
 0x290   :  { %v4533_v8 = vpack.c.bf16 %v1557_v6, %v1555_v3  ;;  %v4535_v44 = vpack.c.bf16 %v1558_v7, %v1556_v5  ;;  %v3471_v3 = vld [vmem:[#allocation10 + $0x268] sm:$0xf0]  ;;  %v3277_v5 = vld [vmem:[#allocation10 + $0xd0] sm:$0xf]  ;;  %v3720_v7 = vld [vmem:[#allocation10 + $0xe4] sm:$0xf0]  ;;  %2454 = vmatpush.bf16.msra.mxu2 %v3282_v0 }
 0x291   :  { %v3474_v6 = vor.u32 %v3765_v18, %v3471_v3  ;;  %v3744_v0 = vld [vmem:[#allocation10 + $0x1a4] sm:$0xf0]  ;;  %v4569_v3 = vld [vmem:[#allocation11] sm:$0x3f] }
 0x292   :  { %2179 = vmatmul.bf16.gmra.mxu0 %v4533_v8  ;;  %2208 = vmatmul.bf16.gmra.mxu1 %v4535_v44  ;;  %v3374_v18 = vor.u32 %v3744_v0, %v3373_v28 }
 0x293   :  { %2237 = vmatmul.bf16.gmra.mxu2 %v4533_v8  ;;  %2266 = vmatmul.bf16.gmra.mxu3 %v4535_v44  ;;  %v1513_v10 = vpop.f32.mrf.mxu2  ;;  %v1542_v40 = vpop.f32.mrf.mxu3 }
 0x294   :  { %v1514_v61 = vadd.f32 %v1513_v10, %v4501_v48  ;;  %v1543_v51 = vadd.f32 %v1542_v40, %v4503_v46  ;;  %v3278_v10 = vor.u32 %v3720_v7, %v3277_v5  ;;  %2483 = vmatpush.bf16.msra.mxu3 %v3474_v6  ;;  %v3469_v40 = vld [vmem:[#allocation10 + $0x250] sm:$0xf]  ;;  %2455 = vmatpush.bf16.msra.mxu2 %v3258_v34  ;;  %v4572_v7 = vperm.slane %v4569_v3, 0 }
 0x295   :  { %v3470_v9 = vor.u32 %v3768_v42, %v3469_v40 }
 0x296   :  { %v1559_v4 = vmax.f32 %v1514_v61, 0.0  ;;  %v1560_v56 = vmax.f32 %v1543_v51, 0.0  ;;  %2396 = vmatpush.bf16.msra.mxu0 %v3278_v10  ;;  %v3708_v61 = vld [vmem:[#allocation10 + $0x84] sm:$0xf0]  ;;  %v4579_v10 = vperm.slane %v4569_v3, 1 }
 0x297   :  { %v3230_v51 = vor.u32 %v3708_v61, %v3229_v54 }
 0x298   :  { %2484 = vmatpush.bf16.msra.mxu3 %v3450_v25  ;;  %2456 = vmatpush.bf16.msra.mxu2 %v3234_v37 }
 0x29a   :  { %2397 = vmatpush.bf16.msra.mxu0 %v3254_v16 }
 0x29b   :  { %v1515_v13 = vpop.f32.mrf.mxu2  ;;  %v1544_v55 = vpop.f32.mrf.mxu3 }
 0x29c   :  { %v1516_v32 = vadd.f32 %v1515_v13, %v4501_v48  ;;  %v1545_v62 = vadd.f32 %v1544_v55, %v4503_v46  ;;  %v3780_v48 = vld [vmem:[#allocation10 + $0x2c4] sm:$0xf0]  ;;  %2485 = vmatpush.bf16.msra.mxu3 %v3426_v19  ;;  %v3421_v13 = vld [vmem:[#allocation10 + $0x1f0] sm:$0xf] }
 0x29d   :  { %v3518_v46 = vor.u32 %v3780_v48, %v3517_v26  ;;  %v3756_v55 = vld [vmem:[#allocation10 + $0x204] sm:$0xf0]  ;;  %v3205_v48 = vld [vmem:[#allocation10 + $0x40] sm:$0xf] }
 0x29e   :  { %v1561_v50 = vmax.f32 %v1516_v32, 0.0  ;;  %v1562_v58 = vmax.f32 %v1545_v62, 0.0  ;;  %2398 = vmatpush.bf16.msra.mxu0 %v3230_v51  ;;  %v3699_v32 = vld [vmem:[#allocation10 + $0x44] sm:$0xf]  ;;  %v3422_v62 = vor.u32 %v3756_v55, %v3421_v13  ;;  %v3206_v1 = vor.u32 %v3702_v59, %v3205_v48 }
 0x29f   :  { %2423 = vmatpush.bf16.msra.mxu1 %v3518_v46  ;;  %v3397_v46 = vld [vmem:[#allocation10 + $0x1c0] sm:$0xf] }
 0x2a0   :  { %v4545_v63 = vpack.c.bf16 %v1561_v50, %v1559_v4  ;;  %v4547_v60 = vpack.c.bf16 %v1562_v58, %v1560_v56  ;;  %v3207_v4 = vld [vmem:[#allocation10 + $0x58] sm:$0xf0]  ;;  %v3747_v56 = vld [vmem:[#allocation10 + $0x1c4] sm:$0xf]  ;;  %v3398_v21 = vor.u32 %v3750_v35, %v3397_v46 }
 0x2a1   :  { %v3399_v50 = vld [vmem:[#allocation10 + $0x1d8] sm:$0xf0]  ;;  %v3210_v58 = vor.u32 %v3699_v32, %v3207_v4 }
 0x2a2   :  { %2184 = vmatmul.bf16.gmra.mxu0 %v4545_v63  ;;  %2213 = vmatmul.bf16.gmra.mxu1 %v4547_v60  ;;  %v3402_v26 = vor.u32 %v3747_v56, %v3399_v50 }
 0x2a3   :  { %2242 = vmatmul.bf16.gmra.mxu2 %v4545_v63  ;;  %2271 = vmatmul.bf16.gmra.mxu3 %v4547_v60 }
 0x2a4   :  { %2424 = vmatpush.bf16.msra.mxu1 %v3494_v29  ;;  %2457 = vmatpush.bf16.msra.mxu2 %v3210_v58  ;;  %v3182_v29 = vor.u32 %v3696_v23, %v3181_v45 }
 0x2a5   :  { %2486 = vmatpush.bf16.msra.mxu3 %v3402_v26  ;;  %2399 = vmatpush.bf16.msra.mxu0 %v3206_v1 }
 0x2a8   :  { %2425 = vmatpush.bf16.msra.mxu1 %v3470_v9  ;;  %2458 = vmatpush.bf16.msra.mxu2 %v3186_v2 }
 0x2a9   :  { %2487 = vmatpush.bf16.msra.mxu3 %v3378_v15  ;;  %2400 = vmatpush.bf16.msra.mxu0 %v3182_v29 }
 0x2ac   :  { %2426 = vmatpush.bf16.msra.mxu1 %v3446_v49 }
 0x2b0   :  { %2427 = vmatpush.bf16.msra.mxu1 %v3422_v62 }
 0x2b2   :  { %2285 = vmatmul.bf16.vlgmr.msrb.gmra.mxu0 %v4509_v30  ;;  %2314 = vmatmul.bf16.vlgmr.msrb.gmra.mxu1 %v4511_v33 }
 0x2b3   :  { %2343 = vmatmul.bf16.vlgmr.msrb.gmra.mxu2 %v4509_v30  ;;  %2372 = vmatmul.bf16.vlgmr.msrb.gmra.mxu3 %v4511_v33 }
 0x2b4   :  { %2428 = vmatpush.bf16.msra.mxu1 %v3398_v21 }
 0x2b8   :  { %2429 = vmatpush.bf16.msra.mxu1 %v3374_v18 }
 0x2c2   :  { %2290 = vmatmul.bf16.gmra.mxu0 %v4521_v57  ;;  %2319 = vmatmul.bf16.gmra.mxu1 %v4523_v31 }
 0x2c3   :  { %2348 = vmatmul.bf16.gmra.mxu2 %v4521_v57  ;;  %2377 = vmatmul.bf16.gmra.mxu3 %v4523_v31 }
 0x2d2   :  { %2295 = vmatmul.bf16.gmra.mxu0 %v4533_v8  ;;  %2324 = vmatmul.bf16.gmra.mxu1 %v4535_v44 }
 0x2d3   :  { %2353 = vmatmul.bf16.gmra.mxu2 %v4533_v8  ;;  %2382 = vmatmul.bf16.gmra.mxu3 %v4535_v44 }
 0x2e2   :  { %2300 = vmatmul.bf16.gmra.mxu0 %v4545_v63  ;;  %2329 = vmatmul.bf16.gmra.mxu1 %v4547_v60 }
 0x2e3   :  { %2358 = vmatmul.bf16.gmra.mxu2 %v4545_v63  ;;  %2387 = vmatmul.bf16.gmra.mxu3 %v4547_v60 }
 0x2ef   :  { %v2170_v5 = vpop.f32.mrf.mxu0  ;;  %v2199_v6 = vpop.f32.mrf.mxu1 }
 0x2f0   :  { %v2171_v40 = vadd.f32 %v2170_v5, %v4572_v7 }
 0x2f2   :  { %2401 = vmatmul.bf16.vlgmr.msra.gmra.mxu0 %v4509_v30  ;;  %2430 = vmatmul.bf16.vlgmr.msra.gmra.mxu1 %v4511_v33  ;;  %v2200_v20 = vadd.f32 %v2199_v6, %v2171_v40 }
 0x2f3   :  { %2459 = vmatmul.bf16.vlgmr.msra.gmra.mxu2 %v4509_v30  ;;  %2488 = vmatmul.bf16.vlgmr.msra.gmra.mxu3 %v4511_v33 }
 0x2f6   :  { %v2228_v42 = vpop.f32.mrf.mxu2  ;;  %v2257_v11 = vpop.f32.mrf.mxu3 }
 0x2f7   :  { %v2229_v9 = vadd.f32 %v2228_v42, %v4579_v10  ;;  %v2172_v41 = vpop.f32.mrf.mxu0  ;;  %v2201_v12 = vpop.f32.mrf.mxu1 }
 0x2f8   :  { %v2173_v36 = vadd.f32 %v2172_v41, %v4572_v7 }
 0x2f9   :  { %v2258_v34 = vadd.f32 %v2257_v11, %v2229_v9 }
 0x2fa   :  { %v2202_v43 = vadd.f32 %v2201_v12, %v2173_v36 }
 0x2fb   :  { %v2509_v25 = vpack.c.bf16 %v2258_v34, %v2200_v20 }
 0x2fd   :  { %2533 = vst [vmem:[#allocation13] sm:$0xff] %v2509_v25 }
 0x2fe   :  { %v2230_v30 = vpop.f32.mrf.mxu2  ;;  %v2259_v53 = vpop.f32.mrf.mxu3 }
 0x2ff   :  { %v2231_v33 = vadd.f32 %v2230_v30, %v4579_v10  ;;  %v2175_v14 = vpop.f32.mrf.mxu0  ;;  %v2204_v16 = vpop.f32.mrf.mxu1  ;;  %v4610_v30 = vperm.slane %v4569_v3, 2 }
 0x300   :  { %v2176_v49 = vadd.f32 %v2175_v14, %v4572_v7 }
 0x301   :  { %v2260_v47 = vadd.f32 %v2259_v53, %v2231_v33  ;;  %v4613_v33 = vperm.slane %v4569_v3, 3 }
 0x302   :  { %2406 = vmatmul.bf16.gmra.mxu0 %v4521_v57  ;;  %2435 = vmatmul.bf16.gmra.mxu1 %v4523_v31  ;;  %v2205_v61 = vadd.f32 %v2204_v16, %v2176_v49 }
 0x303   :  { %v2512_v17 = vpack.c.bf16 %v2260_v47, %v2202_v43  ;;  %2464 = vmatmul.bf16.gmra.mxu2 %v4521_v57  ;;  %2493 = vmatmul.bf16.gmra.mxu3 %v4523_v31 }
 0x305   :  { %2536 = vst [vmem:[#allocation13 + $0x18] sm:$0xff] %v2512_v17 }
 0x306   :  { %v2233_v37 = vpop.f32.mrf.mxu2  ;;  %v2262_v22 = vpop.f32.mrf.mxu3 }
 0x307   :  { %v2234_v24 = vadd.f32 %v2233_v37, %v4579_v10  ;;  %v2177_v54 = vpop.f32.mrf.mxu0  ;;  %v2206_v19 = vpop.f32.mrf.mxu1 }
 0x308   :  { %v2178_v55 = vadd.f32 %v2177_v54, %v4572_v7 }
 0x309   :  { %v2263_v51 = vadd.f32 %v2262_v22, %v2234_v24 }
 0x30a   :  { %v2207_v56 = vadd.f32 %v2206_v19, %v2178_v55 }
 0x30b   :  { %v2515_v13 = vpack.c.bf16 %v2263_v51, %v2205_v61 }
 0x30d   :  { %2539 = vst [vmem:[#allocation13 + $0x30] sm:$0xff] %v2515_v13 }
 0x30e   :  { %v2235_v32 = vpop.f32.mrf.mxu2  ;;  %v2264_v62 = vpop.f32.mrf.mxu3 }
 0x30f   :  { %v2236_v57 = vadd.f32 %v2235_v32, %v4579_v10  ;;  %v2180_v31 = vpop.f32.mrf.mxu0  ;;  %v2209_v4 = vpop.f32.mrf.mxu1 }
 0x310   :  { %v2181_v26 = vadd.f32 %v2180_v31, %v4572_v7 }
 0x311   :  { %v2265_v50 = vadd.f32 %v2264_v62, %v2236_v57 }
 0x312   :  { %2411 = vmatmul.bf16.gmra.mxu0 %v4533_v8  ;;  %2440 = vmatmul.bf16.gmra.mxu1 %v4535_v44  ;;  %v2210_v38 = vadd.f32 %v2209_v4, %v2181_v26 }
 0x313   :  { %v2518_v58 = vpack.c.bf16 %v2265_v50, %v2207_v56  ;;  %2469 = vmatmul.bf16.gmra.mxu2 %v4533_v8  ;;  %2498 = vmatmul.bf16.gmra.mxu3 %v4535_v44 }
 0x315   :  { %2542 = vst [vmem:[#allocation13 + $0x48] sm:$0xff] %v2518_v58 }
 0x316   :  { %v2238_v48 = vpop.f32.mrf.mxu2  ;;  %v2267_v59 = vpop.f32.mrf.mxu3 }
 0x317   :  { %v2239_v46 = vadd.f32 %v2238_v48, %v4579_v10  ;;  %v2182_v1 = vpop.f32.mrf.mxu0  ;;  %v2211_v35 = vpop.f32.mrf.mxu1 }
 0x318   :  { %v2183_v2 = vadd.f32 %v2182_v1, %v4572_v7 }
 0x319   :  { %v2268_v39 = vadd.f32 %v2267_v59, %v2239_v46 }
 0x31a   :  { %v2212_v45 = vadd.f32 %v2211_v35, %v2183_v2 }
 0x31b   :  { %v2521_v21 = vpack.c.bf16 %v2268_v39, %v2210_v38 }
 0x31d   :  { %2545 = vst [vmem:[#allocation13 + $0x60] sm:$0xff] %v2521_v21 }
 0x31e   :  { %v2240_v52 = vpop.f32.mrf.mxu2  ;;  %v2269_v27 = vpop.f32.mrf.mxu3 }
 0x31f   :  { %v2241_v8 = vadd.f32 %v2240_v52, %v4579_v10  ;;  %v2185_v44 = vpop.f32.mrf.mxu0  ;;  %v2214_v15 = vpop.f32.mrf.mxu1 }
 0x320   :  { %v2186_v29 = vadd.f32 %v2185_v44, %v4572_v7 }
 0x321   :  { %v2270_v23 = vadd.f32 %v2269_v27, %v2241_v8 }
 0x322   :  { %2416 = vmatmul.bf16.gmra.mxu0 %v4545_v63  ;;  %2445 = vmatmul.bf16.gmra.mxu1 %v4547_v60  ;;  %v2215_v42 = vadd.f32 %v2214_v15, %v2186_v29 }
 0x323   :  { %v2524_v28 = vpack.c.bf16 %v2270_v23, %v2212_v45  ;;  %2474 = vmatmul.bf16.gmra.mxu2 %v4545_v63  ;;  %2503 = vmatmul.bf16.gmra.mxu3 %v4547_v60 }
 0x325   :  { %2548 = vst [vmem:[#allocation13 + $0x78] sm:$0xff] %v2524_v28 }
 0x326   :  { %v2243_v0 = vpop.f32.mrf.mxu2  ;;  %v2272_v18 = vpop.f32.mrf.mxu3 }
 0x327   :  { %v2244_v5 = vadd.f32 %v2243_v0, %v4579_v10  ;;  %v2187_v6 = vpop.f32.mrf.mxu0  ;;  %v2216_v40 = vpop.f32.mrf.mxu1 }
 0x328   :  { %v2188_v41 = vadd.f32 %v2187_v6, %v4572_v7 }
 0x329   :  { %v2273_v11 = vadd.f32 %v2272_v18, %v2244_v5 }
 0x32a   :  { %v2217_v25 = vadd.f32 %v2216_v40, %v2188_v41 }
 0x32b   :  { %v2527_v9 = vpack.c.bf16 %v2273_v11, %v2215_v42 }
 0x32d   :  { %2551 = vst [vmem:[#allocation13 + $0x90] sm:$0xff] %v2527_v9 }
 0x32e   :  { %v2245_v12 = vpop.f32.mrf.mxu2  ;;  %v2274_v20 = vpop.f32.mrf.mxu3 }
 0x32f   :  { %v2246_v63 = vadd.f32 %v2245_v12, %v4579_v10  ;;  %v2286_v60 = vpop.f32.mrf.mxu0  ;;  %v2315_v34 = vpop.f32.mrf.mxu1 }
 0x330   :  { %v2287_v14 = vadd.f32 %v2286_v60, %v4610_v30 }
 0x331   :  { %v2275_v36 = vadd.f32 %v2274_v20, %v2246_v63 }
 0x332   :  { %v2316_v17 = vadd.f32 %v2315_v34, %v2287_v14 }
 0x333   :  { %v2530_v53 = vpack.c.bf16 %v2275_v36, %v2217_v25 }
 0x335   :  { %2554 = vst [vmem:[#allocation13 + $0xa8] sm:$0xff] %v2530_v53 }
 0x336   :  { %v2344_v16 = vpop.f32.mrf.mxu2  ;;  %v2373_v7 = vpop.f32.mrf.mxu3 }
 0x337   :  { %v2345_v43 = vadd.f32 %v2344_v16, %v4613_v33  ;;  %v2288_v47 = vpop.f32.mrf.mxu0  ;;  %v2317_v10 = vpop.f32.mrf.mxu1 }
 0x338   :  { %v2289_v22 = vadd.f32 %v2288_v47, %v4610_v30 }
 0x339   :  { %v2374_v49 = vadd.f32 %v2373_v7, %v2345_v43 }
 0x33a   :  { %v2318_v13 = vadd.f32 %v2317_v10, %v2289_v22 }
 0x33b   :  { %v2510_v37 = vpack.c.bf16 %v2374_v49, %v2316_v17 }
 0x33d   :  { %2534 = vst [vmem:[#allocation13 + $0x8] sm:$0xff] %v2510_v37 }
 0x33e   :  { %v2346_v24 = vpop.f32.mrf.mxu2  ;;  %v2375_v54 = vpop.f32.mrf.mxu3 }
 0x33f   :  { %v2347_v19 = vadd.f32 %v2346_v24, %v4613_v33  ;;  %v2291_v61 = vpop.f32.mrf.mxu0  ;;  %v2320_v51 = vpop.f32.mrf.mxu1  ;;  %v4632_v24 = vperm.slane %v4569_v3, 4 }
 0x340   :  { %v2292_v62 = vadd.f32 %v2291_v61, %v4610_v30 }
 0x341   :  { %v2376_v55 = vadd.f32 %v2375_v54, %v2347_v19  ;;  %v4635_v19 = vperm.slane %v4569_v3, 5 }
 0x342   :  { %v2321_v58 = vadd.f32 %v2320_v51, %v2292_v62 }
 0x343   :  { %v2513_v32 = vpack.c.bf16 %v2376_v55, %v2318_v13 }
 0x345   :  { %2537 = vst [vmem:[#allocation13 + $0x20] sm:$0xff] %v2513_v32 }
 0x346   :  { %v2349_v57 = vpop.f32.mrf.mxu2  ;;  %v2378_v31 = vpop.f32.mrf.mxu3 }
 0x347   :  { %v2350_v4 = vadd.f32 %v2349_v57, %v4613_v33  ;;  %v2293_v56 = vpop.f32.mrf.mxu0  ;;  %v2322_v50 = vpop.f32.mrf.mxu1 }
 0x348   :  { %v2294_v59 = vadd.f32 %v2293_v56, %v4610_v30 }
 0x349   :  { %v2379_v26 = vadd.f32 %v2378_v31, %v2350_v4 }
 0x34a   :  { %v2323_v21 = vadd.f32 %v2322_v50, %v2294_v59 }
 0x34b   :  { %v2516_v48 = vpack.c.bf16 %v2379_v26, %v2321_v58 }
 0x34d   :  { %2540 = vst [vmem:[#allocation13 + $0x38] sm:$0xff] %v2516_v48 }
 0x34e   :  { %v2351_v46 = vpop.f32.mrf.mxu2  ;;  %v2380_v1 = vpop.f32.mrf.mxu3 }
 0x34f   :  { %v2352_v35 = vadd.f32 %v2351_v46, %v4613_v33  ;;  %v2296_v38 = vpop.f32.mrf.mxu0  ;;  %v2325_v39 = vpop.f32.mrf.mxu1 }
 0x350   :  { %v2297_v27 = vadd.f32 %v2296_v38, %v4610_v30 }
 0x351   :  { %v2381_v2 = vadd.f32 %v2380_v1, %v2352_v35 }
 0x352   :  { %v2326_v28 = vadd.f32 %v2325_v39, %v2297_v27 }
 0x353   :  { %v2519_v52 = vpack.c.bf16 %v2381_v2, %v2323_v21 }
 0x355   :  { %2543 = vst [vmem:[#allocation13 + $0x50] sm:$0xff] %v2519_v52 }
 0x356   :  { %v2354_v8 = vpop.f32.mrf.mxu2  ;;  %v2383_v44 = vpop.f32.mrf.mxu3 }
 0x357   :  { %v2355_v15 = vadd.f32 %v2354_v8, %v4613_v33  ;;  %v2298_v45 = vpop.f32.mrf.mxu0  ;;  %v2327_v23 = vpop.f32.mrf.mxu1 }
 0x358   :  { %v2299_v18 = vadd.f32 %v2298_v45, %v4610_v30 }
 0x359   :  { %v2384_v29 = vadd.f32 %v2383_v44, %v2355_v15 }
 0x35a   :  { %v2328_v9 = vadd.f32 %v2327_v23, %v2299_v18 }
 0x35b   :  { %v2522_v0 = vpack.c.bf16 %v2384_v29, %v2326_v28 }
 0x35d   :  { %2546 = vst [vmem:[#allocation13 + $0x68] sm:$0xff] %v2522_v0 }
 0x35e   :  { %v2356_v5 = vpop.f32.mrf.mxu2  ;;  %v2385_v6 = vpop.f32.mrf.mxu3 }
 0x35f   :  { %v2357_v40 = vadd.f32 %v2356_v5, %v4613_v33  ;;  %v2301_v42 = vpop.f32.mrf.mxu0  ;;  %v2330_v11 = vpop.f32.mrf.mxu1 }
 0x360   :  { %v2302_v20 = vadd.f32 %v2301_v42, %v4610_v30 }
 0x361   :  { %v2386_v41 = vadd.f32 %v2385_v6, %v2357_v40 }
 0x362   :  { %v2331_v53 = vadd.f32 %v2330_v11, %v2302_v20 }
 0x363   :  { %v2525_v12 = vpack.c.bf16 %v2386_v41, %v2328_v9 }
 0x365   :  { %2549 = vst [vmem:[#allocation13 + $0x80] sm:$0xff] %v2525_v12 }
 0x366   :  { %v2359_v63 = vpop.f32.mrf.mxu2  ;;  %v2388_v60 = vpop.f32.mrf.mxu3 }
 0x367   :  { %v2360_v34 = vadd.f32 %v2359_v63, %v4613_v33  ;;  %v2303_v25 = vpop.f32.mrf.mxu0  ;;  %v2332_v36 = vpop.f32.mrf.mxu1 }
 0x368   :  { %v2304_v7 = vadd.f32 %v2303_v25, %v4610_v30 }
 0x369   :  { %v2389_v14 = vadd.f32 %v2388_v60, %v2360_v34 }
 0x36a   :  { %v2333_v37 = vadd.f32 %v2332_v36, %v2304_v7 }
 0x36b   :  { %v2528_v16 = vpack.c.bf16 %v2389_v14, %v2331_v53 }
 0x36d   :  { %2552 = vst [vmem:[#allocation13 + $0x98] sm:$0xff] %v2528_v16 }
 0x36e   :  { %v2361_v43 = vpop.f32.mrf.mxu2  ;;  %v2390_v47 = vpop.f32.mrf.mxu3 }
 0x36f   :  { %v2362_v10 = vadd.f32 %v2361_v43, %v4613_v33  ;;  %v2402_v17 = vpop.f32.mrf.mxu0  ;;  %v2431_v49 = vpop.f32.mrf.mxu1 }
 0x370   :  { %v2403_v61 = vadd.f32 %v2402_v17, %v4632_v24 }
 0x371   :  { %v2391_v22 = vadd.f32 %v2390_v47, %v2362_v10 }
 0x372   :  { %v2432_v32 = vadd.f32 %v2431_v49, %v2403_v61 }
 0x373   :  { %v2531_v54 = vpack.c.bf16 %v2391_v22, %v2333_v37 }
 0x375   :  { %2555 = vst [vmem:[#allocation13 + $0xb0] sm:$0xff] %v2531_v54 }
 0x376   :  { %v2460_v51 = vpop.f32.mrf.mxu2  ;;  %v2489_v30 = vpop.f32.mrf.mxu3 }
 0x377   :  { %v2461_v13 = vadd.f32 %v2460_v51, %v4635_v19  ;;  %v2404_v55 = vpop.f32.mrf.mxu0  ;;  %v2433_v33 = vpop.f32.mrf.mxu1 }
 0x378   :  { %v2405_v31 = vadd.f32 %v2404_v55, %v4632_v24 }
 0x379   :  { %v2490_v62 = vadd.f32 %v2489_v30, %v2461_v13 }
 0x37a   :  { %v2434_v26 = vadd.f32 %v2433_v33, %v2405_v31 }
 0x37b   :  { %v2511_v57 = vpack.c.bf16 %v2490_v62, %v2432_v32 }
 0x37d   :  { %2535 = vst [vmem:[#allocation13 + $0x10] sm:$0xff] %v2511_v57 }
 0x37e   :  { %v2462_v4 = vpop.f32.mrf.mxu2  ;;  %v2491_v56 = vpop.f32.mrf.mxu3 }
 0x37f   :  { %v2463_v3 = vadd.f32 %v2462_v4, %v4635_v19  ;;  %v2407_v50 = vpop.f32.mrf.mxu0  ;;  %v2436_v58 = vpop.f32.mrf.mxu1 }
 0x380   :  { %v2408_v46 = vadd.f32 %v2407_v50, %v4632_v24 }
 0x381   :  { %v2492_v48 = vadd.f32 %v2491_v56, %v2463_v3 }
 0x382   :  { %v2437_v2 = vadd.f32 %v2436_v58, %v2408_v46 }
 0x383   :  { %v2514_v59 = vpack.c.bf16 %v2492_v48, %v2434_v26 }
 0x385   :  { %2538 = vst [vmem:[#allocation13 + $0x28] sm:$0xff] %v2514_v59 }
 0x386   :  { %v2465_v1 = vpop.f32.mrf.mxu2  ;;  %v2494_v35 = vpop.f32.mrf.mxu3 }
 0x387   :  { %v2466_v38 = vadd.f32 %v2465_v1, %v4635_v19  ;;  %v2409_v39 = vpop.f32.mrf.mxu0  ;;  %v2438_v21 = vpop.f32.mrf.mxu1 }
 0x388   :  { %v2410_v8 = vadd.f32 %v2409_v39, %v4632_v24 }
 0x389   :  { %v2495_v52 = vadd.f32 %v2494_v35, %v2466_v38 }
 0x38a   :  { %v2439_v28 = vadd.f32 %v2438_v21, %v2410_v8 }
 0x38b   :  { %v2517_v27 = vpack.c.bf16 %v2495_v52, %v2437_v2 }
 0x38d   :  { %2541 = vst [vmem:[#allocation13 + $0x40] sm:$0xff] %v2517_v27 }
 0x38e   :  { %v2467_v44 = vpop.f32.mrf.mxu2  ;;  %v2496_v15 = vpop.f32.mrf.mxu3 }
 0x38f   :  { %v2468_v45 = vadd.f32 %v2467_v44, %v4635_v19  ;;  %v2412_v23 = vpop.f32.mrf.mxu0  ;;  %v2441_v0 = vpop.f32.mrf.mxu1 }
 0x390   :  { %v2413_v5 = vadd.f32 %v2412_v23, %v4632_v24 }
 0x391   :  { %v2497_v29 = vadd.f32 %v2496_v15, %v2468_v45 }
 0x392   :  { %v2442_v9 = vadd.f32 %v2441_v0, %v2413_v5 }
 0x393   :  { %v2520_v18 = vpack.c.bf16 %v2497_v29, %v2439_v28 }
 0x395   :  { %2544 = vst [vmem:[#allocation13 + $0x58] sm:$0xff] %v2520_v18 }
 0x396   :  { %v2470_v6 = vpop.f32.mrf.mxu2  ;;  %v2499_v40 = vpop.f32.mrf.mxu3 }
 0x397   :  { %v2471_v42 = vadd.f32 %v2470_v6, %v4635_v19  ;;  %v2414_v11 = vpop.f32.mrf.mxu0  ;;  %v2443_v20 = vpop.f32.mrf.mxu1 }
 0x398   :  { %v2415_v63 = vadd.f32 %v2414_v11, %v4632_v24 }
 0x399   :  { %v2500_v41 = vadd.f32 %v2499_v40, %v2471_v42 }
 0x39a   :  { %v2444_v53 = vadd.f32 %v2443_v20, %v2415_v63 }
 0x39b   :  { %v2523_v12 = vpack.c.bf16 %v2500_v41, %v2442_v9 }
 0x39d   :  { %2547 = vst [vmem:[#allocation13 + $0x70] sm:$0xff] %v2523_v12 }
 0x39e   :  { %v2472_v60 = vpop.f32.mrf.mxu2  ;;  %v2501_v34 = vpop.f32.mrf.mxu3 }
 0x39f   :  { %v2473_v25 = vadd.f32 %v2472_v60, %v4635_v19  ;;  %v2417_v36 = vpop.f32.mrf.mxu0  ;;  %v2446_v43 = vpop.f32.mrf.mxu1 }
 0x3a0   :  { %v2418_v7 = vadd.f32 %v2417_v36, %v4632_v24 }
 0x3a1   :  { %v2502_v14 = vadd.f32 %v2501_v34, %v2473_v25 }
 0x3a2   :  { %v2447_v49 = vadd.f32 %v2446_v43, %v2418_v7 }
 0x3a3   :  { %v2526_v16 = vpack.c.bf16 %v2502_v14, %v2444_v53 }
 0x3a5   :  { %2550 = vst [vmem:[#allocation13 + $0x88] sm:$0xff] %v2526_v16 }
 0x3a6   :  { %v2475_v47 = vpop.f32.mrf.mxu2  ;;  %v2504_v10 = vpop.f32.mrf.mxu3 }
 0x3a7   :  { %v2476_v17 = vadd.f32 %v2475_v47, %v4635_v19  ;;  %v2419_v22 = vpop.f32.mrf.mxu0  ;;  %v2448_v13 = vpop.f32.mrf.mxu1 }
 0x3a8   :  { %v2420_v61 = vadd.f32 %v2419_v22, %v4632_v24 }
 0x3a9   :  { %v2505_v37 = vadd.f32 %v2504_v10, %v2476_v17 }
 0x3aa   :  { %v2449_v33 = vadd.f32 %v2448_v13, %v2420_v61 }
 0x3ab   :  { %v2529_v54 = vpack.c.bf16 %v2505_v37, %v2447_v49 }
 0x3ad   :  { %2553 = vst [vmem:[#allocation13 + $0xa0] sm:$0xff] %v2529_v54 }
 0x3ae   :  { %v2477_v51 = vpop.f32.mrf.mxu2  ;;  %v2506_v55 = vpop.f32.mrf.mxu3 }
 0x3af   :  { %v2478_v30 = vadd.f32 %v2477_v51, %v4635_v19 }
 0x3b1   :  { %v2507_v32 = vadd.f32 %v2506_v55, %v2478_v30 }
 0x3b3   :  { %v2532_v62 = vpack.c.bf16 %v2507_v32, %v2449_v33 }
 0x3b5   :  { %2556 = vst [vmem:[#allocation13 + $0xb8] sm:$0xff] %v2532_v62 }
 0x3b6   :  { %2569 = dma.vmem_to_hbm [thread:$0]  %s2562_s18, 3072, %s2564_s21, [#allocation4], %s3984_s14, %s3984_s14, %s3985_s15  }
 0x3b7   :  { %3975 = dma.done.wait [#allocation4], 3072  }
 0x3b8   :  { %3976 = vsyncadd [#allocation4], 4294964224 }
 0x3b9   :  { %2574 = vsyncpa [#allocation3], 1 }
 0x3ba   :  { %2575 = vsyncpa [#allocation6], 1 }
 0x3bb   :  { %2576 = vsyncpa [#allocation9], 1 }
 0x3bc   :  { %2577 = vsyncpa [#allocation12], 1 }
 0x3bd   :  { %2578 = vsyncpa [#allocation4], 1 }

</bundles_post_ra>
